<compile_context>
chip_gen: v7x
topology: tpu7x:2x2x1
jax: 0.10.0
libtpu: 0.0.40
codegen_flags: <defaults>
</compile_context>

<pallas_src>
import jax
import jax.numpy as jnp
from jax.experimental import pallas as pl
from jax.experimental.pallas import tpu as pltpu


# ----------------------------------------------------------------------------
# helpers
# ----------------------------------------------------------------------------
def _bilinear_matrix(out_size, in_size):
    """(out_size, in_size) interpolation matrix, align_corners=True."""
    if in_size == 1:
        return jnp.ones((out_size, 1), jnp.float32)
    src = jnp.arange(out_size, dtype=jnp.float32) * (in_size - 1) / (out_size - 1)
    lo = jnp.clip(jnp.floor(src).astype(jnp.int32), 0, in_size - 2)
    frac = src - lo.astype(jnp.float32)
    rows = jnp.arange(out_size)
    m = jnp.zeros((out_size, in_size), jnp.float32)
    m = m.at[rows, lo].set(1.0 - frac)
    m = m.at[rows, lo + 1].add(frac)
    return m


def _padded_interp_matrix(out_total, out_start, up_size, in_size):
    """Interp matrix with F.pad's zero rows baked in: rows
    [out_start, out_start + up_size) carry the bilinear weights, rest is 0."""
    a = _bilinear_matrix(up_size, in_size)
    top = jnp.zeros((out_start, in_size), jnp.float32)
    bot = jnp.zeros((out_total - out_start - up_size, in_size), jnp.float32)
    return jnp.concatenate([top, a, bot], axis=0)


def _vmem_limit_bytes():
    """Generation-aware scoped-VMEM request: ~85% of physical per-core VMEM,
    capped at 112 MiB (v5e/v6e: 128 MiB -> ~109 MiB; v7x: 64 MiB -> ~54 MiB)."""
    cap = None
    try:
        info = pltpu.get_tpu_info()
        cap = getattr(info, "vmem_capacity_bytes", None)
    except Exception:
        cap = None
    if not cap:
        cap = 64 * 1024 * 1024          # conservative fallback (v7x per-core)
    return min(int(cap * 0.85), 112 * 1024 * 1024)


def _pick_row_block(total, bytes_fn, budget, multiple=8):
    """Largest divisor of `total` (multiple of `multiple`, or == total) whose
    estimated VMEM footprint fits `budget`; smallest valid divisor otherwise."""
    cands = [t for t in range(total, 0, -1)
             if total % t == 0 and (t == total or t % multiple == 0)]
    for t in cands:
        if bytes_fn(t) <= budget:
            return t
    return cands[-1]


def _bytes_A(th, h1, w1, c1, ws, c2, isz):
    ctot = c1 + c2
    b = 2 * h1 * w1 * c1 * isz              # x1 block (double-buffered, full map)
    b += 2 * th * ws * c2 * isz             # x2 block
    b += 2 * (th * h1 + ws * w1) * isz      # interp matrices
    b += 2 * th * ws * ctot * isz           # output block
    b += 8 * ws * h1 * c1                   # uw (f32) + transpose temp
    b += isz * h1 * ws * c1                 # uwt slab (compute dtype)
    b += 4 * th * ws * c1                   # up (f32)
    b += isz * th * ws * ctot               # concat temp
    return int(b * 1.25)


def _bytes_B(th, w, cin, cout, isz):
    b = 2 * (th + 2) * w * cin * isz        # xbuf double buffer (row halo only)
    b += 2 * th * w * cout * isz            # output block (double-buffered)
    b += 9 * cin * cout * isz + 4 * 128     # folded weight (single copy) + bias
    b += (th + 2) * w * cin * isz           # x load
    b += 5 * th * w * cin * isz             # left / right / packed-patch temps
    b += 8 * th * w * cout                  # f32 acc + y
    return int(b * 1.25)


# ----------------------------------------------------------------------------
# Kernel A: separable bilinear 2x upsample + F.pad + channel concat (fused)
# ----------------------------------------------------------------------------
def _up_concat_kernel(x1_ref, x2_ref, ahp_ref, awp_ref, o_ref):
    # x1_ref : (1, W1, H1*C1)   low-res map, width-major, channels flattened
    # x2_ref : (1, TH, Ws*C2)   skip-connection row block (lane-dense)
    # ahp_ref: (TH, H1)         H-interp rows for this block (pad rows = 0)
    # awp_ref: (Ws, W1)         W-interp matrix (pad rows = 0)
    # o_ref  : (1, TH, Ws*(C1+C2))
    h1c1 = x1_ref.shape[2]
    ws = awp_ref.shape[0]
    th, h1 = ahp_ref.shape
    c1 = h1c1 // h1
    c2 = x2_ref.shape[2] // ws

    # W-direction interpolation as one wide MXU matmul: (Ws, W1) @ (W1, H1*C1).
    uw = jnp.dot(awp_ref[...], x1_ref[0], preferred_element_type=jnp.float32)
    # Re-group so H1 becomes the contraction dim (single leading-dims
    # transpose; lane dim C1 untouched), cast back to the MXU operand dtype.
    uwt = uw.reshape(ws, h1, c1).transpose(1, 0, 2).reshape(h1, ws * c1)
    uwt = uwt.astype(ahp_ref.dtype)
    # H-direction: (TH, H1) @ (H1, Ws*C1) -> already in lane-dense row layout.
    up = jnp.dot(ahp_ref[...], uwt, preferred_element_type=jnp.float32)
    # torch.cat([x2, x1_up], dim=channel): interleave per pixel, single wide
    # flat store (no f32 upcast of x2).
    x2b = x2_ref[0].reshape(th, ws, c2)
    cat = jnp.concatenate([x2b, up.reshape(th, ws, c1).astype(o_ref.dtype)],
                          axis=-1)
    o_ref[0] = cat.reshape(th, ws * (c1 + c2))


def upsample_concat(x1_whc, x2, *, row_block=None, vmem_limit=None):
    """Bilinear 2x upsample (align_corners=True) of x1, pad to x2's spatial
    size and channel-concat [x2, x1_up]; fused into one Pallas kernel.

    x1_whc: (N, W1, H1, C1) width-major (W-interp matmul runs first)
    x2    : (N, Hs, Ws, C2)
    returns (N, Hs, Ws, C2 + C1) NHWC.
    """
    n, w1, h1, c1 = x1_whc.shape
    n2, hs, ws, c2 = x2.shape
    assert n == n2
    hu, wu = 2 * h1, 2 * w1
    dy, dx = hs - hu, ws - wu
    assert dy >= 0 and dx >= 0, "x2 must be at least as large as upsampled x1"
    cdt = x2.dtype
    ahp = _padded_interp_matrix(hs, dy // 2, hu, h1).astype(cdt)   # (Hs, H1)
    awp = _padded_interp_matrix(ws, dx // 2, wu, w1).astype(cdt)   # (Ws, W1)

    limit = vmem_limit or _vmem_limit_bytes()
    budget = int(limit * 0.75)
    isz = jnp.dtype(cdt).itemsize
    th = row_block or _pick_row_block(
        hs, lambda t: _bytes_A(t, h1, w1, c1, ws, c2, isz), budget)
    assert hs % th == 0 and (th == hs or th % 8 == 0)
    ctot = c1 + c2

    # Lane-dense views (free reshapes of contiguous NHWC / NWHC arrays).
    x1_flat = x1_whc.reshape(n, w1, h1 * c1)
    x2_flat = x2.reshape(n, hs, ws * c2)

    out_flat = pl.pallas_call(
        _up_concat_kernel,
        out_shape=jax.ShapeDtypeStruct((n, hs, ws * ctot), x2.dtype),
        grid=(n, hs // th),
        in_specs=[
            pl.BlockSpec((1, w1, h1 * c1), lambda i, j: (i, 0, 0)),
            pl.BlockSpec((1, th, ws * c2), lambda i, j: (i, j, 0)),
            pl.BlockSpec((th, h1), lambda i, j: (j, 0)),
            pl.BlockSpec((ws, w1), lambda i, j: (0, 0)),
        ],
        out_specs=pl.BlockSpec((1, th, ws * ctot), lambda i, j: (i, j, 0)),
        compiler_params=pltpu.CompilerParams(
            dimension_semantics=("parallel", "parallel"),
            vmem_limit_bytes=limit,
        ),
    )(x1_flat, x2_flat, ahp, awp)
    return out_flat.reshape(n, hs, ws, ctot)


# ----------------------------------------------------------------------------
# Kernel B: 3x3 "same" conv + (folded BN) bias + ReLU, row-blocked with a
# manually double-buffered halo DMA and cross-image prefetch.
# ----------------------------------------------------------------------------
def _conv3x3_bias_relu_kernel(x_hbm, w_ref, b_ref, o_ref, xbuf, sem):
    # x_hbm : (N, H, W, Cin) HBM (pl.ANY), un-padded activation
    # w_ref : (3, 3*Cin, Cout) VMEM whole-array (single-buffered; BN folded,
    #         kw taps packed into the contraction dim)
    # b_ref : (1, Cout) f32 VMEM whole-array (folded BN bias)
    # o_ref : (1, TH, W*Cout) VMEM output block (lane-dense)
    # xbuf  : (2, TH+2, W, Cin) VMEM double buffer (row halo only)
    # sem   : (2, 3) DMA semaphores: slot x {body, top-row, bottom-row}
    _, h, w_out, cin = x_hbm.shape
    th = xbuf.shape[1] - 2
    cout = w_ref.shape[2]

    n = pl.program_id(0)
    hb = pl.program_id(1)
    n_imgs = pl.num_programs(0)
    nhb = pl.num_programs(1)
    g = n * nhb + hb                       # global sequential step index
    slot = g % 2

    def window_copies(img, blk, slot_):
        r0 = blk * th
        body = pltpu.make_async_copy(
            x_hbm.at[img, pl.ds(r0, th)],
            xbuf.at[slot_, pl.ds(1, th)],
            sem.at[slot_, 0])
        # Halo-row source offsets are clamped in-bounds so the descriptors are
        # always legal; whether they run is decided by the pl.when guards.
        top = pltpu.make_async_copy(
            x_hbm.at[img, pl.ds(jnp.maximum(r0 - 1, 0), 1)],
            xbuf.at[slot_, pl.ds(0, 1)],
            sem.at[slot_, 1])
        bot = pltpu.make_async_copy(
            x_hbm.at[img, pl.ds(jnp.minimum(r0 + th, h - 1), 1)],
            xbuf.at[slot_, pl.ds(th + 1, 1)],
            sem.at[slot_, 2])
        return body, top, bot

    def start_window(img, blk, slot_):
        body, top, bot = window_copies(img, blk, slot_)
        body.start()

        @pl.when(blk > 0)
        def _():
            top.start()

        @pl.when(blk < nhb - 1)
        def _():
            bot.start()

    def wait_window(img, blk, slot_):
        body, top, bot = window_copies(img, blk, slot_)
        body.wait()

        @pl.when(blk > 0)
        def _():
            top.wait()

        @pl.when(blk < nhb - 1)
        def _():
            bot.wait()

    # Prime only the very first window of the (sequential) grid; every later
    # window -- including the first block of the next image -- is prefetched
    # one step ahead, so there is no per-image cold start.
    @pl.when(g == 0)
    def _():
        start_window(n, hb, slot)

    wait_window(n, hb, slot)

    nxt = 1 - slot

    @pl.when(hb + 1 < nhb)
    def _():
        start_window(n, hb + 1, nxt)

    @pl.when(jnp.logical_and(hb + 1 == nhb, n + 1 < n_imgs))
    def _():
        start_window(n + 1, hb * 0, nxt)       # first block of the next image

    cur = xbuf.at[slot]

    # Zero only the halo rows the DMA skipped (image top / bottom boundary).
    @pl.when(hb == 0)
    def _():
        cur[0:1, :, :] = jnp.zeros((1, w_out, cin), xbuf.dtype)

    @pl.when(hb == nhb - 1)
    def _():
        cur[th + 1:th + 2, :, :] = jnp.zeros((1, w_out, cin), xbuf.dtype)

    # 3x3 conv as three (TH*W, 3*Cin) @ (3*Cin, Cout) MXU matmuls (kw taps
    # packed into the contraction dim), f32 accumulation.  The 1-pixel zero
    # column border is materialized in-register while packing the patch.
    x = cur[...]                               # (TH+2, W, Cin)
    zcol = jnp.zeros((th, 1, cin), x.dtype)
    acc = jnp.zeros((th * w_out, cout), jnp.float32)
    for kh in range(3):
        rows = x[kh:kh + th]                   # (TH, W, Cin)
        left = jnp.concatenate([zcol, rows[:, :w_out - 1]], axis=1)
        right = jnp.concatenate([rows[:, 1:], zcol], axis=1)
        patch = jnp.concatenate([left, rows, right], axis=-1)
        patch = patch.reshape(th * w_out, 3 * cin)
        acc = acc + jnp.dot(patch, w_ref[kh],
                            preferred_element_type=jnp.float32)
    y = jnp.maximum(acc + b_ref[...], 0.0)
    y = y.reshape(th, w_out, cout).reshape(th, w_out * cout)
    o_ref[0] = y.astype(o_ref.dtype)


def conv3x3_bias_relu(x, w_folded, bias, *, row_block=None, vmem_limit=None):
    """3x3 same-padding conv + bias + ReLU.  `w_folded` is HWIO with the
    eval-mode BatchNorm scale already folded in; `bias` is the folded bias."""
    n, h, w, cin = x.shape
    cout = w_folded.shape[-1]
    isz = jnp.dtype(x.dtype).itemsize
    limit = vmem_limit or _vmem_limit_bytes()
    budget = int(limit * 0.75)
    th = row_block or _pick_row_block(
        h, lambda t: _bytes_B(t, w, cin, cout, isz), budget)
    assert h % th == 0 and (th == h or th % 8 == 0)

    w_packed = w_folded.reshape(3, 3 * cin, cout)      # kw packed into K dim

    out_flat = pl.pallas_call(
        _conv3x3_bias_relu_kernel,
        out_shape=jax.ShapeDtypeStruct((n, h, w * cout), x.dtype),
        grid=(n, h // th),
        in_specs=[
            pl.BlockSpec(memory_space=pl.ANY),                   # x stays in HBM
            pl.BlockSpec(memory_space=pltpu.MemorySpace.VMEM),   # weight, 1 copy
            pl.BlockSpec(memory_space=pltpu.MemorySpace.VMEM),   # bias, 1 copy
        ],
        out_specs=pl.BlockSpec((1, th, w * cout), lambda i, j: (i, j, 0)),
        scratch_shapes=[
            pltpu.VMEM((2, th + 2, w, cin), x.dtype),
            pltpu.SemaphoreType.DMA((2, 3)),
        ],
        compiler_params=pltpu.CompilerParams(
            # Fully sequential grid: required for the cross-image prefetch
            # (the last block of image n prefetches block 0 of image n+1).
            dimension_semantics=("arbitrary", "arbitrary"),
            vmem_limit_bytes=limit,
        ),
    )(x, w_packed, bias.reshape(1, cout).astype(jnp.float32))
    return out_flat.reshape(n, h, w, cout)


# ----------------------------------------------------------------------------
# Full forward of `up` (bilinear=True)
# ----------------------------------------------------------------------------
def up_forward(x1_nchw, x2_nchw, params, *, compute_dtype=None,
               row_block_up=None, row_block_conv=None):
    # bf16 compute is recommended on all generations (v5e/v6e/v7x MXUs are
    # bf16-native and it halves HBM traffic); f32 default keeps the tight
    # numerical check in __main__ valid.
    cdt = compute_dtype or x1_nchw.dtype
    # x1: NCHW -> width-major (N, W1, H1, C1) in one transpose so the fused
    # upsample kernel can run its W-interp matmul first. x2: NCHW -> NHWC.
    x1 = jnp.transpose(x1_nchw, (0, 3, 2, 1)).astype(cdt)
    x2 = jnp.transpose(x2_nchw, (0, 2, 3, 1)).astype(cdt)

    limit = _vmem_limit_bytes()
    x = upsample_concat(x1, x2, row_block=row_block_up, vmem_limit=limit)

    # eval-mode BatchNorm folded into conv weights (scale) and bias.
    w1 = (params["w1"] * params["scale1"]).astype(cdt)
    w2 = (params["w2"] * params["scale2"]).astype(cdt)
    x = conv3x3_bias_relu(x, w1, params["bias1"],
                          row_block=row_block_conv, vmem_limit=limit)
    x = conv3x3_bias_relu(x, w2, params["bias2"],
                          row_block=row_block_conv, vmem_limit=limit)
    # TODO(synk): keep NHWC end-to-end if the consumer allows; this final
    # transpose is an extra HBM pass kept only for NCHW PyTorch parity.
    return jnp.transpose(x, (0, 3, 1, 2)).astype(x1_nchw.dtype)


# ----------------------------------------------------------------------------
# Deterministic parameter init (conv bias + eval-mode BN folded to scale/bias)
# ----------------------------------------------------------------------------
def init_params(key, in_ch, out_ch):
    eps = 1e-5
    ks = jax.random.split(key, 12)

    def conv_bn(kw, kb, kg, kbe, km, kv, cin, cout):
        w = 0.1 * jax.random.normal(kw, (cout, cin, 3, 3), jnp.float32)   # OIHW
        b = 0.1 * jax.random.normal(kb, (cout,), jnp.float32)
        gamma = 1.0 + 0.1 * jax.random.normal(kg, (cout,), jnp.float32)
        beta = 0.1 * jax.random.normal(kbe, (cout,), jnp.float32)
        rmean = 0.1 * jax.random.normal(km, (cout,), jnp.float32)
        rvar = 1.0 + 0.1 * jax.random.uniform(kv, (cout,), jnp.float32)
        scale = gamma / jnp.sqrt(rvar + eps)
        bias = beta + (b - rmean) * scale
        return jnp.transpose(w, (2, 3, 1, 0)), scale, bias                # HWIO

    w1, s1, b1 = conv_bn(*ks[0:6], in_ch, out_ch)
    w2, s2, b2 = conv_bn(*ks[6:12], out_ch, out_ch)
    return dict(w1=w1, scale1=s1, bias1=b1, w2=w2, scale2=s2, bias2=b2)


# ----------------------------------------------------------------------------
# Pure-JAX reference for numerical verification
# ----------------------------------------------------------------------------
def ref_forward(x1_nchw, x2_nchw, params):
    x1 = jnp.transpose(x1_nchw, (0, 2, 3, 1))
    x2 = jnp.transpose(x2_nchw, (0, 2, 3, 1))
    N, H1, W1, C = x1.shape
    ah = _bilinear_matrix(2 * H1, H1)
    aw = _bilinear_matrix(2 * W1, W1)
    x1u = jnp.einsum("Hh,nhwc->nHwc", ah, x1)
    x1u = jnp.einsum("Ww,nhwc->nhWc", aw, x1u)
    diffY = x2.shape[1] - x1u.shape[1]
    diffX = x2.shape[2] - x1u.shape[2]
    x1u = jnp.pad(x1u, ((0, 0),
                        (diffY // 2, diffY - diffY // 2),
                        (diffX // 2, diffX - diffX // 2),
                        (0, 0)))
    x = jnp.concatenate([x2, x1u], axis=-1)

    def cbr(x, w, s, b):
        y = jax.lax.conv_general_dilated(
            x, w, (1, 1), "SAME", dimension_numbers=("NHWC", "HWIO", "NHWC"))
        return jnp.maximum(y * s + b, 0.0)

    x = cbr(x, params["w1"], params["scale1"], params["bias1"])
    x = cbr(x, params["w2"], params["scale2"], params["bias2"])
    return jnp.transpose(x, (0, 3, 1, 2))


if __name__ == "__main__":
    key = jax.random.PRNGKey(0)
    in_ch, out_ch = 8, 4
    N, H1, W1 = 2, 8, 8
    k1, k2, kp = jax.random.split(key, 3)
    # PyTorch NCHW inputs: x1 is the low-res feature map, x2 is the skip.
    x1 = jax.random.normal(k1, (N, in_ch // 2, H1, W1), jnp.float32)
    x2 = jax.random.normal(k2, (N, in_ch // 2, 2 * H1, 2 * W1), jnp.float32)
    params = init_params(kp, in_ch, out_ch)

    ref = jax.block_until_ready(ref_forward(x1, x2, params))

    # f32 path, small row blocks -> exercises first / interior / last halo
    # paths and the cross-image prefetch; tight numerical check.
    out = jax.block_until_ready(
        up_forward(x1, x2, params, row_block_up=8, row_block_conv=8))
    assert out.shape == (N, out_ch, 2 * H1, 2 * W1), out.shape
    err = float(jnp.max(jnp.abs(out - ref)))
    assert jnp.allclose(out, ref, atol=1e-4, rtol=1e-4), err

    # bf16 path (recommended on v5e/v6e/v7x), VMEM-budget-driven auto row
    # blocks; looser tolerance (bf16 operands, f32 accumulation).
    out_bf16 = jax.block_until_ready(
        up_forward(x1, x2, params, compute_dtype=jnp.bfloat16))
    err_bf16 = float(jnp.max(jnp.abs(out_bf16.astype(jnp.float32) - ref)))
    assert err_bf16 < 0.25, err_bf16

    print("KERNEL_OK")
</pallas_src>

<mosaic_0001>
module attributes {stable_mosaic.version = 11 : i64} {
  func.func @_up_concat_kernel(%arg0: i32, %arg1: i32, %arg2: memref<1x8x32xf32, #tpu.memory_space<vmem>>, %arg3: memref<1x8x64xf32, #tpu.memory_space<vmem>>, %arg4: memref<8x8xf32, #tpu.memory_space<vmem>>, %arg5: memref<16x8xf32, #tpu.memory_space<vmem>>, %arg6: memref<1x8x128xf32, #tpu.memory_space<vmem>>) attributes {dimension_semantics = [#tpu.dimension_semantics<parallel>, #tpu.dimension_semantics<parallel>], iteration_bounds = array<i64: 2, 2>, scalar_prefetch = 0 : i64, scratch_operands = 0 : i64, tpu.core_type = #tpu.core_type<tc>, window_params = [{transform_indices = @transform_0, window_bounds = array<i64: 1, 8, 32>}, {transform_indices = @transform_1, window_bounds = array<i64: 1, 8, 64>}, {transform_indices = @transform_2, window_bounds = array<i64: 8, 8>}, {pipeline_mode = #tpu.pipeline_mode<synchronous>, transform_indices = @transform_3, window_bounds = array<i64: 16, 8>}, {transform_indices = @transform_4, window_bounds = array<i64: 1, 8, 128>}]} {
    %c0 = arith.constant 0 : index
    %c0_0 = arith.constant 0 : index
    %0 = vector.load %arg5[%c0, %c0_0] : memref<16x8xf32, #tpu.memory_space<vmem>>, vector<16x8xf32>
    %c0_1 = arith.constant 0 : index
    %c0_2 = arith.constant 0 : index
    %c0_3 = arith.constant 0 : index
    %1 = vector.load %arg2[%c0_1, %c0_2, %c0_3] : memref<1x8x32xf32, #tpu.memory_space<vmem>>, vector<1x8x32xf32>
    %2 = vector.shape_cast %1 : vector<1x8x32xf32> to vector<8x32xf32>
    %cst = arith.constant dense<0.000000e+00> : vector<16x32xf32>
    %3 = tpu.matmul %0, %2, %cst {dimension_numbers = #tpu.dot_dimension_numbers<[1], [0], [0], [1], [0, 0, 1, 1], [], []>} : vector<16x8xf32>, vector<8x32xf32>, vector<16x32xf32> -> vector<16x32xf32>
    %4 = vector.shape_cast %3 : vector<16x32xf32> to vector<16x8x4xf32>
    %5 = tpu.transpose %4, [1, 0, 2] : vector<16x8x4xf32> -> vector<8x16x4xf32>
    %6 = vector.shape_cast %5 : vector<8x16x4xf32> to vector<8x64xf32>
    %c0_4 = arith.constant 0 : index
    %c0_5 = arith.constant 0 : index
    %7 = vector.load %arg4[%c0_4, %c0_5] : memref<8x8xf32, #tpu.memory_space<vmem>>, vector<8x8xf32>
    %cst_6 = arith.constant dense<0.000000e+00> : vector<8x64xf32>
    %8 = tpu.matmul %7, %6, %cst_6 {dimension_numbers = #tpu.dot_dimension_numbers<[1], [0], [0], [1], [0, 0, 1, 1], [], []>} : vector<8x8xf32>, vector<8x64xf32>, vector<8x64xf32> -> vector<8x64xf32>
    %c0_7 = arith.constant 0 : index
    %c0_8 = arith.constant 0 : index
    %c0_9 = arith.constant 0 : index
    %9 = vector.load %arg3[%c0_7, %c0_8, %c0_9] : memref<1x8x64xf32, #tpu.memory_space<vmem>>, vector<1x8x64xf32>
    %10 = vector.shape_cast %9 : vector<1x8x64xf32> to vector<8x64xf32>
    %11 = vector.shape_cast %10 : vector<8x64xf32> to vector<8x16x4xf32>
    %12 = vector.shape_cast %8 : vector<8x64xf32> to vector<8x16x4xf32>
    %13 = tpu.concatenate %11, %12 in 2 : vector<8x16x4xf32>, vector<8x16x4xf32> -> vector<8x16x8xf32>
    %14 = vector.shape_cast %13 : vector<8x16x8xf32> to vector<8x128xf32>
    %c0_10 = arith.constant 0 : index
    %c0_11 = arith.constant 0 : index
    %c0_12 = arith.constant 0 : index
    %15 = vector.load %arg6[%c0_10, %c0_11, %c0_12] : memref<1x8x128xf32, #tpu.memory_space<vmem>>, vector<1x8x128xf32>
    %16 = vector.shape_cast %15 : vector<1x8x128xf32> to vector<8x128xf32>
    %17 = vector.shape_cast %14 : vector<8x128xf32> to vector<1x8x128xf32>
    tpu.vector_store %arg6[%c0_10, %c0_11, %c0_12], %17 {strides = array<i32>} : memref<1x8x128xf32, #tpu.memory_space<vmem>>, vector<1x8x128xf32>,
    return
  }
  func.func @transform_0(%arg0: i32, %arg1: i32) -> (i32, i32, i32) {
    %c0_i32 = arith.constant 0 : i32
    %c0_i32_0 = arith.constant 0 : i32
    %c0_i32_1 = arith.constant 0 : i32
    return %arg0, %c0_i32, %c0_i32_0 : i32, i32, i32
  }
  func.func @transform_1(%arg0: i32, %arg1: i32) -> (i32, i32, i32) {
    %c0_i32 = arith.constant 0 : i32
    %c0_i32_0 = arith.constant 0 : i32
    return %arg0, %arg1, %c0_i32 : i32, i32, i32
  }
  func.func @transform_2(%arg0: i32, %arg1: i32) -> (i32, i32) {
    %c0_i32 = arith.constant 0 : i32
    %c0_i32_0 = arith.constant 0 : i32
    return %arg1, %c0_i32 : i32, i32
  }
  func.func @transform_3(%arg0: i32, %arg1: i32) -> (i32, i32) {
    %c0_i32 = arith.constant 0 : i32
    %c0_i32_0 = arith.constant 0 : i32
    %c0_i32_1 = arith.constant 0 : i32
    return %c0_i32, %c0_i32_0 : i32, i32
  }
  func.func @transform_4(%arg0: i32, %arg1: i32) -> (i32, i32, i32) {
    %c0_i32 = arith.constant 0 : i32
    %c0_i32_0 = arith.constant 0 : i32
    return %arg0, %arg1, %c0_i32 : i32, i32, i32
  }
}

</mosaic_0001>

<bundles_post_ra>
// kernel: tpu_custom_call.1
= control target key start
LH: loop header
LB: loop body
LE: loop exit
PB: predicated region body
PF: predicated region fallthrough
CT: control target
= control target key end

     0   :  { %9 = vsyncpa [#allocation3], 0  ;;  %s3427_s0 = inlined_call_operand.vmem [shape: f32[2,8,32], index: 0, kind: input, shape index: {}]   ;;  %s3428_s1 = inlined_call_operand.vmem [shape: f32[2,16,64], index: 1, kind: input, shape index: {}]   ;;  %s3429_s2 = inlined_call_operand.vmem [shape: f32[16,8], index: 2, kind: input, shape index: {}]   ;;  %s3430_s3 = inlined_call_operand.vmem [shape: f32[16,8], index: 3, kind: input, shape index: {}]   ;;  %s3431_s4 = inlined_call_operand.hbm [shape: f32[2,16,128], index: 4, kind: output, shape index: {}]  }
   0x1   :  { %11 = vsyncpa [#allocation3 + $0x1], 0  ;;  %s2882_s15 = smov 0   ;;  %s2884_s16 = smov 0  }
   0x2   :  { %s2886_s17 = smov 0   ;;  %s2888_s18 = smov 0  }
   0x3   :  { %s2890_s19 = smov 0   ;;  %s2892_s20 = smov 0  }
   0x4   :  { %s2894_s21 = smov 0   ;;  %s2896_s22 = smov 0  }
   0x5 LB: > { %s2554_s23 = sadd.s32 4294967295, %s2819_s22   ;;  %s2555_s24 = sadd.s32 4294967294, %s2819_s22   ;;  %s2819_s22 = sphi %s2896_s22, %s17_s22   ;;  %s2815_s21 = sphi %s2894_s21, %s3476_s21   ;;  %s2811_s20 = sphi %s2892_s20, %s3475_s20   ;;  %s2807_s19 = sphi %s2890_s19, %s3474_s19   ;;  %s2803_s18 = sphi %s2888_s18, %s3473_s18   ;;  %s2799_s17 = sphi %s2886_s17, %s3472_s17   ;;  %s2795_s16 = sphi %s2884_s16, %s3471_s16   ;;  %s2791_s15 = sphi %s2882_s15, %s3470_s15  }
   0x6   : > { %s26_s25 = sadd.s32 1, %s2811_s20  ;;  %s29_s26 = sadd.s32 1, %s2815_s21 }
   0x7   : > { %p27_p0 = scmp.ge.s32.totalorder %s26_s25, 2  ;;  %p149_p1 = scmp.ne.s32.totalorder %s2799_s17, %s2795_s16 }
   0x8   : > { %p150_p2 = scmp.eq.s32.totalorder %s2554_s23, 3  ;;  %p155_p5 = scmp.ne.s32.totalorder %s2795_s16, %s2791_s15 }
   0x9   : > { %s3478_s25 = smov (%p27_p0, %s26_s25), 0  ;;  %s3480_s26 = smov (!%p27_p0, %s29_s26), %s2815_s21 }
   0xa   : > { %s135_s27 = ssub.s32 %s2811_s20, %s3478_s25  ;;  %p2933_p3 = por %p150_p2, %p149_p1 }
   0xb   : > { %p31_p4 = scmp.ge.s32.totalorder %s3480_s26, 2  ;;  %p156_p6 = scmp.eq.s32.totalorder %s2555_s24, 3 }
   0xc   : > { %p2558_p7 = scmp.ge.s32.totalorder %s2819_s22, 1  ;;  %p202_p9 = scmp.lt.s32.totalorder %s2819_s22, 5 }
   0xd   : > { %s3482_s26 = smov (%p31_p4, %s3480_s26), 0  ;;  %p2942_p8 = por %p156_p6, %p155_p5 }
   0xe   : > { %s134_s30 = ssub.s32 %s2815_s21, %s3482_s26  ;;  %s139_s5 = sadd.s32 1, %s2799_s17 }
   0xf   : > { %s136_s6 = sor.u32 %s135_s27, %s134_s30  ;;  %p203_p10 = pnand %p2558_p7, %p202_p9 }
  0x10   : > { %p137_p11 = scmp.eq.s32.totalorder %s136_s6, 0  ;;  %p239_p12 = scmp.lt.s32.totalorder (!%p203_p10), %s2807_s19, 1  ;;  %v255_v0 = vld [vmem:[%s3430_s3] sm:$0xff] (!%p203_p10)  ;;  %vm258_vm0 = vcmask (!%p203_p10), 64512   ;;  %v256_v2 = vld [vmem:[%s3430_s3 + $0x8] sm:$0xff] (!%p203_p10)  ;;  %v389_v7 = vlaneseq (!%p203_p10)  ;;  %vm2841_vm1 = vmmov (!%p203_p10), 0  }
  0x11   : > { %206 = sbr.rel (%p203_p10) target bundleno = 1199 (0x4af), region = 36  ;;  %2611 = vmatprep.mubr.msk.f32.mxu0 (!%p203_p10), %vm258_vm0, %v255_v0  ;;  %s3445_s27 = smov (!%p203_p10), 120   ;;  %v2828_v5 = vmov (!%p203_p10), 1983009808   ;;  %v2829_v8 = vmov (!%p203_p10), 1934713408  }
  0x12   : > { %s2951_s7 = scalar_select %p137_p11, %s2799_s17, %s139_s5  }
  0x13   : > { %s2822_s30 = smov (!%p203_p10), 124   ;;  %s2823_s5 = smov (!%p203_p10), 116   ;;  %v387_v6 = vunpack.c.l.s4 (!%p203_p10), %v2828_v5  ;;  %v451_v9 = vunpack.c.l.s4 (!%p203_p10), %v2829_v8  ;;  %v390_v11 = vshrl.u32 (!%p203_p10), %v389_v7, 7  ;;  %vm1260_vm2 = vcmask (!%p203_p10), 31744  }
  0x14   : > { %s3441_s6 = smov (!%p203_p10), 112   ;;  %s3449_s8 = smov (!%p203_p10), 108   ;;  %vm1263_vm3 = vcmask (!%p203_p10), 97280   ;;  %vm1265_vm4 = vcmask (!%p203_p10), 130048   ;;  %vm1267_vm5 = vcmask (!%p203_p10), 162816   ;;  %vm1269_vm6 = vcmask (!%p203_p10), 195584  }
  0x15   : > { %s3443_s9 = smov (!%p203_p10), 104   ;;  %v388_v10 = vunpack.c.0.s8 (!%p203_p10), %v387_v6  ;;  %v452_v14 = vunpack.c.0.s8 (!%p203_p10), %v451_v9  ;;  %s2830_s12 = smov (!%p203_p10), 36   ;;  %vm1271_vm7 = vcmask (!%p203_p10), 228352   ;;  %vm1273_vm8 = vcmask (!%p203_p10), 261120  }
  0x16   : > { %s3433_s13 = smov (!%p203_p10), 32   ;;  %s3432_s23 = smov (!%p203_p10), 40   ;;  %vm1275_vm9 = vcmask (!%p203_p10), 293888   ;;  %vm1277_vm10 = vcmask (!%p203_p10), 326656   ;;  %vm1279_vm11 = vcmask (!%p203_p10), 359424   ;;  %vm1281_vm12 = vcmask (!%p203_p10), 392192  }
  0x17   : > { %v2983_v15 = vsub.s32 (!%p203_p10), %v388_v10, %v390_v11  ;;  %v2985_v22 = vsub.s32 (!%p203_p10), %v452_v14, %v390_v11  ;;  %s3437_s24 = smov (!%p203_p10), 4   ;;  %p245_p13 = scmp.lt.s32.totalorder (!%p203_p10), %s2803_s18, 1  ;;  %vm1283_vm13 = vcmask (!%p203_p10), 424960   ;;  %vm1285_vm14 = vcmask (!%p203_p10), 457728  }
  0x18   : > { %s2959_s10 = scalar_select %p239_p12, %s2807_s19, 1  ;;  %vm1287_vm15 = vcmask 490496  }
  0x1a   : > { %s2560_s11 = sshll.u32 %s2959_s10, 3 }
  0x1b   : > { %s242_s14 = scalar_lea.vmem %s3427_s0, %s2560_s11  ;;  %s3450_s11 = smov 100  }
  0x1c   : > { %v257_v1 = vld [vmem:[%s242_s14] sm:$0xff]  ;;  %s2832_s14 = smov 44  }
  0x1d   : > { %2609 = vmatprep.subr.mxu0 %v257_v1 }
  0x1e   : > { %2610 = vmatpush3.msra.mxu0 %v257_v1 }
  0x1f   : > { %2612 = vmatmul.mubr.msk.f32.vlgmr.msra.gmra.mrb[0].mxu0 %vm258_vm0, %v256_v2 }
  0xf2   : > { %v2613_v3 = vpop.f32.mrb[0].mxu0 }
  0xf3   : > { %350 = vrot.lane.b32.xlu0 %v2613_v3, %s3445_s27  ;;  %344 = vrot.lane.b32.xlu1 %v2613_v3, %s2822_s30  ;;  %v331_v4 = vpop.f32.mrb[1].mxu0 }
  0xf7   : > { %356 = vrot.lane.b32.xlu1 %v2613_v3, %s2823_s5  ;;  %342 = vrot.lane.b32.xlu0 %v331_v4, %s2822_s30 }
  0xfb   : > { %354 = vrot.lane.b32.xlu1 %v331_v4, %s2823_s5  ;;  %348 = vrot.lane.b32.xlu0 %v331_v4, %s3445_s27 }
  0xff   : > { %360 = vrot.lane.b32.xlu1 %v331_v4, %s3441_s6  ;;  %366 = vrot.lane.b32.xlu0 %v331_v4, %s3449_s8 }
 0x103   : > { %372 = vrot.lane.b32.xlu1 %v331_v4, %s3443_s9  ;;  %378 = vrot.lane.b32.xlu0 %v331_v4, %s3450_s11 }
 0x107   : > { %368 = vrot.lane.b32.xlu1 %v2613_v3, %s3449_s8  ;;  %362 = vrot.lane.b32.xlu0 %v2613_v3, %s3441_s6 }
 0x10b   : > { %380 = vrot.lane.b32.xlu1 %v2613_v3, %s3450_s11  ;;  %374 = vrot.lane.b32.xlu0 %v2613_v3, %s3443_s9 }
 0x165   : > { %v351_v12 = vpop.permute.xlu0 %350  ;;  %v345_v13 = vpop.permute.xlu1 %344 }
 0x166   : > { %v520_v16 = vcombine.low %v2613_v3, %v351_v12  ;;  %v521_v17 = vcombine.high %v2613_v3, %v351_v12 }
 0x168   : > { %v528_v23 = vrot.slane %v520_v16, %v2983_v15  ;;  %v535_v24 = vrot.slane %v521_v17, %v2983_v15 }
 0x169   : > { %v357_v18 = vpop.permute.xlu1 %356  ;;  %v343_v19 = vpop.permute.xlu0 %342 }
 0x16a   : > { %v536_v20 = vcombine.low %v345_v13, %v357_v18  ;;  %v537_v21 = vcombine.high %v345_v13, %v357_v18 }
 0x16c   : > { %v544_v25 = vrot.slane %v536_v20, %v2983_v15  ;;  %v551_v26 = vrot.slane %v537_v21, %v2983_v15 }
 0x16d   : > { %v355_v27 = vpop.permute.xlu1 %354  ;;  %v349_v28 = vpop.permute.xlu0 %348 }
 0x16e   : > { %v584_v29 = vcombine.low %v528_v23, %v544_v25  ;;  %v585_v30 = vcombine.high %v528_v23, %v544_v25  ;;  %v600_v31 = vcombine.low %v535_v24, %v551_v26  ;;  %v601_v32 = vcombine.high %v535_v24, %v551_v26 }
 0x16f   : > { %v400_v33 = vcombine.low %v343_v19, %v355_v27  ;;  %v401_v34 = vcombine.high %v343_v19, %v355_v27  ;;  %v384_v35 = vcombine.low %v331_v4, %v349_v28  ;;  %v385_v36 = vcombine.high %v331_v4, %v349_v28 }
 0x170   : > { %v592_v37 = vrot.slane %v584_v29, %v2985_v22  ;;  %v599_v38 = vrot.slane %v585_v30, %v2985_v22  ;;  %v608_v45 = vrot.slane %v600_v31, %v2985_v22  ;;  %v615_v46 = vrot.slane %v601_v32, %v2985_v22 }
 0x171   : > { %v408_v39 = vrot.slane %v400_v33, %v2983_v15  ;;  %v415_v40 = vrot.slane %v401_v34, %v2983_v15  ;;  %v392_v41 = vrot.slane %v384_v35, %v2983_v15  ;;  %v399_v42 = vrot.slane %v385_v36, %v2983_v15  ;;  %v361_v43 = vpop.permute.xlu1 %360  ;;  %v367_v44 = vpop.permute.xlu0 %366 }
 0x172   : > { %v2574_v47 = vcombine.low %v592_v37, %v599_v38  ;;  %v2576_v48 = vcombine.high %v592_v37, %v599_v38  ;;  %v2578_v59 = vcombine.low %v608_v45, %v615_v46  ;;  %v2580_v60 = vcombine.high %v608_v45, %v615_v46 }
 0x173   : > { %v448_v49 = vcombine.low %v392_v41, %v408_v39  ;;  %v449_v50 = vcombine.high %v392_v41, %v408_v39  ;;  %v464_v53 = vcombine.low %v399_v42, %v415_v40  ;;  %v465_v54 = vcombine.high %v399_v42, %v415_v40 }
 0x174   : > { %v800_v57 = vrot.slane %v2574_v47, %v2983_v15  ;;  %v816_v58 = vrot.slane %v2576_v48, %v2983_v15  ;;  %v3010_v11 = vrot.slane %v2578_v59, %v2983_v15  ;;  %v3013_v12 = vrot.slane %v2580_v60, %v2983_v15 }
 0x175   : > { %v456_v51 = vrot.slane %v448_v49, %v2985_v22  ;;  %v463_v52 = vrot.slane %v449_v50, %v2985_v22  ;;  %v373_v55 = vpop.permute.xlu1 %372  ;;  %v379_v56 = vpop.permute.xlu0 %378  ;;  %v472_v1 = vrot.slane %v464_v53, %v2985_v22  ;;  %v479_v2 = vrot.slane %v465_v54, %v2985_v22 }
 0x176   : > { %v416_v61 = vcombine.low %v361_v43, %v373_v55  ;;  %v417_v62 = vcombine.high %v361_v43, %v373_v55  ;;  %v432_v63 = vcombine.low %v367_v44, %v379_v56  ;;  %v433_v0 = vcombine.high %v367_v44, %v379_v56 }
 0x177   : > { %v2566_v3 = vcombine.low %v456_v51, %v463_v52  ;;  %v2568_v4 = vcombine.high %v456_v51, %v463_v52  ;;  %v856_v18 = vcombine.low %v800_v57, %v816_v58  ;;  %v857_v19 = vcombine.high %v800_v57, %v816_v58 }
 0x178   : > { %v424_v7 = vrot.slane %v416_v61, %v2983_v15  ;;  %v431_v8 = vrot.slane %v417_v62, %v2983_v15  ;;  %v440_v9 = vrot.slane %v432_v63, %v2983_v15  ;;  %v447_v10 = vrot.slane %v433_v0, %v2983_v15 }
 0x179   : > { %v369_v5 = vpop.permute.xlu1 %368  ;;  %v363_v6 = vpop.permute.xlu0 %362  ;;  %v2570_v20 = vcombine.low %v472_v1, %v479_v2  ;;  %v2572_v21 = vcombine.high %v472_v1, %v479_v2  ;;  %v664_v25 = vrot.slane %v2566_v3, %v2983_v15  ;;  %v680_v26 = vrot.slane %v2568_v4, %v2983_v15 }
 0x17a   : > { %v480_v13 = vcombine.low %v424_v7, %v440_v9  ;;  %v481_v14 = vcombine.high %v424_v7, %v440_v9  ;;  %v496_v16 = vcombine.low %v431_v8, %v447_v10  ;;  %v497_v17 = vcombine.high %v431_v8, %v447_v10 }
 0x17b   : > { %v720_v41 = vcombine.low %v664_v25, %v680_v26  ;;  %v721_v42 = vcombine.high %v664_v25, %v680_v26  ;;  %v864_v55 = vrot.slane %v856_v18, %v2985_v22  ;;  %v871_v56 = vrot.slane %v857_v19, %v2985_v22 }
 0x17c   : > { %v488_v27 = vrot.slane %v480_v13, %v2985_v22  ;;  %v495_v28 = vrot.slane %v481_v14, %v2985_v22  ;;  %v504_v33 = vrot.slane %v496_v16, %v2985_v22  ;;  %v511_v34 = vrot.slane %v497_v17, %v2985_v22 }
 0x17d   : > { %v381_v23 = vpop.permute.xlu1 %380  ;;  %v375_v24 = vpop.permute.xlu0 %374  ;;  %v696_v57 = vrot.slane %v2570_v20, %v2983_v15  ;;  %v712_v58 = vrot.slane %v2572_v21, %v2983_v15  ;;  %v728_v63 = vrot.slane %v720_v41, %v2985_v22  ;;  %v735_v0 = vrot.slane %v721_v42, %v2985_v22 }
 0x17e   : > { %v568_v29 = vcombine.low %v369_v5, %v381_v23  ;;  %v569_v30 = vcombine.high %v369_v5, %v381_v23  ;;  %v552_v31 = vcombine.low %v363_v6, %v375_v24  ;;  %v553_v32 = vcombine.high %v363_v6, %v375_v24 }
 0x17f   : > { %v2567_v35 = vcombine.low %v488_v27, %v495_v28  ;;  %v2569_v36 = vcombine.high %v488_v27, %v495_v28  ;;  %v2571_v49 = vcombine.low %v504_v33, %v511_v34  ;;  %v2573_v50 = vcombine.high %v504_v33, %v511_v34 }
 0x180   : > { %v576_v37 = vrot.slane %v568_v29, %v2983_v15  ;;  %v583_v38 = vrot.slane %v569_v30, %v2983_v15  ;;  %v560_v39 = vrot.slane %v552_v31, %v2983_v15  ;;  %v567_v40 = vrot.slane %v553_v32, %v2983_v15 }
 0x181   : > { %v671_v43 = vrot.slane %v2567_v35, %v2983_v15  ;;  %v687_v44 = vrot.slane %v2569_v36, %v2983_v15  ;;  %v703_v1 = vrot.slane %v2571_v49, %v2983_v15  ;;  %v719_v2 = vrot.slane %v2573_v50, %v2983_v15 }
 0x182   : > { %v616_v45 = vcombine.low %v560_v39, %v576_v37  ;;  %v617_v46 = vcombine.high %v560_v39, %v576_v37  ;;  %v632_v47 = vcombine.low %v567_v40, %v583_v38  ;;  %v633_v48 = vcombine.high %v567_v40, %v583_v38 }
 0x183   : > { %v736_v51 = vcombine.low %v671_v43, %v687_v44  ;;  %v737_v52 = vcombine.high %v671_v43, %v687_v44  ;;  %v2590_v7 = vcombine.low %v864_v55, %v871_v56  ;;  %v2592_v8 = vcombine.high %v864_v55, %v871_v56 }
 0x184   : > { %v624_v53 = vrot.slane %v616_v45, %v2985_v22  ;;  %v631_v54 = vrot.slane %v617_v46, %v2985_v22  ;;  %v640_v59 = vrot.slane %v632_v47, %v2985_v22  ;;  %v647_v60 = vrot.slane %v633_v48, %v2985_v22 }
 0x185   : > { %v744_v3 = vrot.slane %v736_v51, %v2985_v22  ;;  %v751_v4 = vrot.slane %v737_v52, %v2985_v22  ;;  %v752_v9 = vcombine.low %v696_v57, %v712_v58  ;;  %v753_v10 = vcombine.high %v696_v57, %v712_v58 }
 0x186   : > { %v2575_v61 = vcombine.low %v624_v53, %v631_v54  ;;  %v2577_v62 = vcombine.high %v624_v53, %v631_v54  ;;  %v2579_v13 = vcombine.low %v640_v59, %v647_v60  ;;  %v2581_v14 = vcombine.high %v640_v59, %v647_v60 }
 0x187   : > { %v2582_v18 = vcombine.low %v728_v63, %v735_v0  ;;  %v2584_v19 = vcombine.high %v728_v63, %v735_v0  ;;  %v768_v20 = vcombine.low %v703_v1, %v719_v2  ;;  %v769_v21 = vcombine.high %v703_v1, %v719_v2 }
 0x188   : > { %v807_v5 = vrot.slane %v2575_v61, %v2983_v15  ;;  %v823_v6 = vrot.slane %v2577_v62, %v2983_v15  ;;  %v2586_v23 = vcombine.low %v744_v3, %v751_v4  ;;  %v2588_v24 = vcombine.high %v744_v3, %v751_v4 }
 0x189   : > { %v1072_v27 = vrot.slane %v2590_v7, %v2983_v15  ;;  %v1088_v28 = vrot.slane %v2592_v8, %v2983_v15  ;;  %v839_v29 = vrot.slane %v2579_v13, %v2983_v15  ;;  %v855_v30 = vrot.slane %v2581_v14, %v2983_v15 }
 0x18a   : > { %v872_v16 = vcombine.low %v807_v5, %v823_v6  ;;  %v873_v17 = vcombine.high %v807_v5, %v823_v6  ;;  %v968_v31 = vrot.slane %v2586_v23, %v2983_v15  ;;  %v984_v32 = vrot.slane %v2588_v24, %v2983_v15 }
 0x18b   : > { %v936_v35 = vrot.slane %v2582_v18, %v2983_v15  ;;  %v952_v36 = vrot.slane %v2584_v19, %v2983_v15  ;;  %v760_v37 = vrot.slane %v752_v9, %v2985_v22  ;;  %v767_v38 = vrot.slane %v753_v10, %v2985_v22 }
 0x18c   : > { %v880_v25 = vrot.slane %v872_v16, %v2985_v22  ;;  %v887_v26 = vrot.slane %v873_v17, %v2985_v22  ;;  %v776_v39 = vrot.slane %v768_v20, %v2985_v22  ;;  %v783_v40 = vrot.slane %v769_v21, %v2985_v22 }
 0x18d   : > { %v1128_v43 = vcombine.low %v1072_v27, %v1088_v28  ;;  %v1129_v44 = vcombine.high %v1072_v27, %v1088_v28  ;;  %v888_v45 = vcombine.low %v3010_v11, %v3013_v12  ;;  %v1024_v46 = vcombine.low %v968_v31, %v984_v32 }
 0x18e   : > { %v2594_v33 = vcombine.low %v880_v25, %v887_v26  ;;  %v2596_v34 = vcombine.high %v880_v25, %v887_v26  ;;  %v2587_v47 = vcombine.low %v776_v39, %v783_v40  ;;  %v904_v48 = vcombine.low %v839_v29, %v855_v30 }
 0x18f   : > { %v2589_v51 = vcombine.high %v776_v39, %v783_v40  ;;  %v889_v52 = vcombine.high %v3010_v11, %v3013_v12  ;;  %v992_v53 = vcombine.low %v936_v35, %v952_v36  ;;  %v2583_v54 = vcombine.low %v760_v37, %v767_v38 }
 0x190   : > { %v1104_v41 = vrot.slane %v2594_v33, %v2983_v15  ;;  %v1120_v42 = vrot.slane %v2596_v34, %v2983_v15  ;;  %v2585_v55 = vcombine.high %v760_v37, %v767_v38  ;;  %v905_v56 = vcombine.high %v839_v29, %v855_v30 }
 0x191   : > { %v1136_v57 = vrot.slane %v1128_v43, %v2985_v22  ;;  %v1143_v59 = vrot.slane %v1129_v44, %v2985_v22  ;;  %v3068_v61 = vrot.slane %v1024_v46, %v2985_v22  ;;  %v1025_v62 = vcombine.high %v968_v31, %v984_v32 }
 0x192   : > { %v1160_v49 = vcombine.low %v1104_v41, %v1120_v42  ;;  %v1161_v50 = vcombine.high %v1104_v41, %v1120_v42  ;;  %v975_v63 = vrot.slane %v2587_v47, %v2983_v15  ;;  %v991_v12 = vrot.slane %v2589_v51, %v2983_v15 }
 0x193   : > { %v912_v1 = vrot.slane %v904_v48, %v2985_v22  ;;  %v3074_v2 = vrot.slane %v992_v53, %v2985_v22  ;;  %v993_v3 = vcombine.high %v936_v35, %v952_v36  ;;  %v943_v4 = vrot.slane %v2583_v54, %v2983_v15 }
 0x194   : > { %v1168_v58 = vrot.slane %v1160_v49, %v2985_v22  ;;  %v1175_v60 = vrot.slane %v1161_v50, %v2985_v22  ;;  %v959_v5 = vrot.slane %v2585_v55, %v2983_v15  ;;  %v896_v6 = vrot.slane %v888_v45, %v2985_v22 }
 0x195   : > { %v903_v7 = vrot.slane %v889_v52, %v2985_v22  ;;  %v919_v8 = vrot.slane %v905_v56, %v2985_v22  ;;  %v1039_v10 = vrot.slane %v1025_v62, %v2985_v22  ;;  %v1056_v13 = vcombine.low %v3074_v2, %v3068_v61 }
 0x196   : > { %v1193_v0 = vcombine.high %v1136_v57, %v1168_v58  ;;  %v1192_v11 = vcombine.low %v1136_v57, %v1168_v58  ;;  %v1195_v9 = vcombine.high %v1143_v59, %v1175_v60  ;;  %v1194_v14 = vcombine.low %v1143_v59, %v1175_v60 }
 0x197   : > { %v1040_v16 = vcombine.low %v975_v63, %v991_v12  ;;  %v2595_v17 = vcombine.low %v912_v1, %v919_v8  ;;  %v2597_v18 = vcombine.high %v912_v1, %v919_v8  ;;  %v1007_v19 = vrot.slane %v993_v3, %v2985_v22 }
 0x198   : > { %1233 = vrot.lane.b32.xlu0 %v1193_v0, %s2830_s12  ;;  %1229 = vrot.lane.b32.xlu1 %v1192_v11, %s3433_s13  ;;  %v1008_v20 = vcombine.low %v943_v4, %v959_v5  ;;  %v2591_v21 = vcombine.low %v896_v6, %v903_v7  ;;  %v2593_v23 = vcombine.high %v896_v6, %v903_v7  ;;  %s3434_s12 = smov 8   ;;  %v2838_v44 = vmov 0.0   ;;  %s2839_s13 = smov 20  }
 0x199   : > { %v1057_v24 = vcombine.high %v3074_v2, %v3068_v61  ;;  %v1058_v25 = vcombine.low %v1007_v19, %v1039_v10  ;;  %v1048_v26 = vrot.slane %v1040_v16, %v2985_v22  ;;  %v1041_v27 = vcombine.high %v975_v63, %v991_v12  ;;  %2614 = vmatprep.subr.mxu1 %v2838_v44 }
 0x19a   : > { %v1111_v28 = vrot.slane %v2595_v17, %v2983_v15  ;;  %v1127_v29 = vrot.slane %v2597_v18, %v2983_v15  ;;  %v1009_v30 = vcombine.high %v943_v4, %v959_v5  ;;  %v1016_v31 = vrot.slane %v1008_v20, %v2985_v22  ;;  %2616 = vmatprep.mubr.msk.f32.mxu1 %vm2841_vm1, %v2838_v44 }
 0x19b   : > { %v1079_v32 = vrot.slane %v2591_v21, %v2983_v15  ;;  %v1095_v33 = vrot.slane %v2593_v23, %v2983_v15  ;;  %v1059_v34 = vcombine.high %v1007_v19, %v1039_v10  ;;  %v1055_v36 = vrot.slane %v1041_v27, %v2985_v22 }
 0x19c   : > { %1241 = vrot.lane.b32.xlu0 %v1195_v9, %s2832_s14  ;;  %1237 = vrot.lane.b32.xlu1 %v1194_v14, %s3432_s23  ;;  %v1060_v35 = vcombine.low %v1016_v31, %v1048_v26  ;;  %v1176_v37 = vcombine.low %v1111_v28, %v1127_v29  ;;  %s2836_s14 = smov 12   ;;  %s3435_s23 = smov 16   ;;  %v1023_v38 = vrot.slane %v1009_v30, %v2985_v22  ;;  %vm2419_vm1 = vcmask 523264  }
 0x19d   : > { %v1144_v39 = vcombine.low %v1079_v32, %v1095_v33  ;;  %v1061_v40 = vcombine.high %v1016_v31, %v1048_v26  ;;  %v1177_v43 = vcombine.high %v1111_v28, %v1127_v29  ;;  %v1145_v46 = vcombine.high %v1079_v32, %v1095_v33 }
 0x19e   : > { %v1062_v41 = vcombine.low %v1023_v38, %v1055_v36  ;;  %v1184_v42 = vrot.slane %v1176_v37, %v2985_v22  ;;  %v1063_v47 = vcombine.high %v1023_v38, %v1055_v36 }
 0x19f   : > { %v1152_v45 = vrot.slane %v1144_v39, %v2985_v22  ;;  %v1191_v49 = vrot.slane %v1177_v43, %v2985_v22  ;;  %v1159_v50 = vrot.slane %v1145_v46, %v2985_v22 }
 0x1a0   : > { %1201 = vrot.lane.b32.xlu0 %v1057_v24, %s3437_s24  ;;  %1205 = vrot.lane.b32.xlu1 %v1058_v25, %s3434_s12  ;;  %s3436_s12 = smov 24   ;;  %s2846_s24 = smov 60  }
 0x1a1   : > { %v1196_v48 = vcombine.low %v1152_v45, %v1184_v42  ;;  %v1197_v51 = vcombine.high %v1152_v45, %v1184_v42  ;;  %v1198_v52 = vcombine.low %v1159_v50, %v1191_v49  ;;  %v1199_v53 = vcombine.high %v1159_v50, %v1191_v49 }
 0x1a4   : > { %1209 = vrot.lane.b32.xlu0 %v1059_v34, %s2836_s14  ;;  %1213 = vrot.lane.b32.xlu1 %v1060_v35, %s3435_s23  ;;  %s2842_s14 = smov 28   ;;  %s3440_s23 = smov 48  }
 0x1a8   : > { %1217 = vrot.lane.b32.xlu0 %v1061_v40, %s2839_s13  ;;  %1221 = vrot.lane.b32.xlu1 %v1062_v41, %s3436_s12  ;;  %s2844_s13 = smov 52   ;;  %s3439_s12 = smov 56  }
 0x1ac   : > { %1225 = vrot.lane.b32.xlu0 %v1063_v47, %s2842_s14  ;;  %1245 = vrot.lane.b32.xlu1 %v1196_v48, %s3440_s23 }
 0x1b0   : > { %1249 = vrot.lane.b32.xlu0 %v1197_v51, %s2844_s13  ;;  %1253 = vrot.lane.b32.xlu1 %v1198_v52, %s3439_s12  ;;  %s3447_s12 = smov 96   ;;  %s2848_s13 = smov 88  }
 0x1b4   : > { %1257 = vrot.lane.b32.xlu0 %v1199_v53, %s2846_s24  ;;  %s3115_s24 = scalar_select %p245_p13, %s2803_s18, 1 }
 0x1b6   : > { %s2563_s14 = sshll.u32 %s3115_s24, 3 }
 0x1b7   : > { %s254_s23 = scalar_lea.vmem %s3429_s2, %s2563_s14 }
 0x1b8   : > { %v1289_v20 = vld [vmem:[%s254_s23] sm:$0xff]  ;;  %s2561_s23 = sshll.u32 %s2959_s10, 1  ;;  %s2851_s10 = smov 84  }
 0x1b9   : > { %s248_s14 = sadd.s32 %s2561_s23, %s3115_s24  ;;  %s3451_s24 = smov 72  }
 0x1ba   : > { %s2853_s23 = smov 76  }
 0x20a   : > { %v1234_v54 = vpop.permute.xlu0 %1233  ;;  %v1230_v55 = vpop.permute.xlu1 %1229 }
 0x20e   : > { %v1242_v56 = vpop.permute.xlu0 %1241  ;;  %v1238_v57 = vpop.permute.xlu1 %1237 }
 0x212   : > { %v1202_v58 = vpop.permute.xlu0 %1201  ;;  %v1206_v59 = vpop.permute.xlu1 %1205 }
 0x213   : > { %v1261_v60 = vsel %vm1260_vm2, %v1056_v13, %v1202_v58 }
 0x214   : > { %v1262_v62 = vsel %vm258_vm0, %v1261_v60, %v1206_v59 }
 0x216   : > { %v1210_v63 = vpop.permute.xlu0 %1209  ;;  %v1214_v0 = vpop.permute.xlu1 %1213 }
 0x217   : > { %v1264_v11 = vsel %vm1263_vm3, %v1262_v62, %v1210_v63  ;;  %vm2425_vm3 = vcmask 719872  }
 0x218   : > { %v1266_v12 = vsel %vm1265_vm4, %v1264_v11, %v1214_v0 }
 0x21a   : > { %v1218_v1 = vpop.permute.xlu0 %1217  ;;  %v1222_v3 = vpop.permute.xlu1 %1221 }
 0x21b   : > { %v1268_v4 = vsel %vm1267_vm5, %v1266_v12, %v1218_v1  ;;  %vm2429_vm5 = vcmask 850944  }
 0x21c   : > { %v1270_v61 = vsel %vm1269_vm6, %v1268_v4, %v1222_v3 }
 0x21e   : > { %v1226_v2 = vpop.permute.xlu0 %1225  ;;  %v1246_v6 = vpop.permute.xlu1 %1245 }
 0x21f   : > { %v1272_v5 = vsel %vm1271_vm7, %v1270_v61, %v1226_v2  ;;  %vm2433_vm7 = vcmask 982016  }
 0x220   : > { %v1274_v7 = vsel %vm1273_vm8, %v1272_v5, %v1230_v55 }
 0x221   : > { %v1276_v8 = vsel %vm1275_vm9, %v1274_v7, %v1234_v54 }
 0x222   : > { %v1278_v9 = vsel %vm1277_vm10, %v1276_v8, %v1238_v57  ;;  %v1250_v10 = vpop.permute.xlu0 %1249  ;;  %v1254_v17 = vpop.permute.xlu1 %1253 }
 0x223   : > { %v1280_v13 = vsel %vm1279_vm11, %v1278_v9, %v1242_v56 }
 0x224   : > { %v1282_v14 = vsel %vm1281_vm12, %v1280_v13, %v1246_v6 }
 0x225   : > { %v1284_v16 = vsel %vm1283_vm13, %v1282_v14, %v1250_v10 }
 0x226   : > { %v1286_v18 = vsel %vm1285_vm14, %v1284_v16, %v1254_v17  ;;  %v1258_v19 = vpop.permute.xlu0 %1257 }
 0x227   : > { %v1288_v21 = vsel %vm1287_vm15, %v1286_v18, %v1258_v19 }
 0x228   : > { %2615 = vmatpush3.msra.mxu1 %v1288_v21 }
 0x229   : > { %2617 = vmatmul.mubr.msk.f32.vlgmr.msra.gmra.mrb[0].mxu1 %vm258_vm0, %v1289_v20 }
 0x2fc   : > { %v3127_v23 = vpop.f32.mrb[0].mxu1 }
 0x2fd   : > { %1686 = vrot.lane.b32.xlu0 %v3127_v23, %s3445_s27  ;;  %1683 = vrot.lane.b32.xlu1 %v3127_v23, %s2822_s30  ;;  %v2618_v24 = vpop.f32.mrb[1].mxu1  ;;  %s2850_s27 = smov 80  }
 0x301   : > { %1692 = vrot.lane.b32.xlu0 %v3127_v23, %s3441_s6  ;;  %1689 = vrot.lane.b32.xlu1 %v3127_v23, %s2823_s5  ;;  %s2849_s6 = smov 92  }
 0x305   : > { %1698 = vrot.lane.b32.xlu0 %v3127_v23, %s3443_s9  ;;  %1695 = vrot.lane.b32.xlu1 %v3127_v23, %s3449_s8  ;;  %s2562_s9 = sshll.u32 %s248_s14, 3  ;;  %s2854_s14 = smov 68  }
 0x306   : > { %s3455_s8 = smov 120  }
 0x309   : > { %1704 = vrot.lane.b32.xlu0 %v3127_v23, %s3447_s12  ;;  %1701 = vrot.lane.b32.xlu1 %v3127_v23, %s3450_s11  ;;  %s250_s11 = scalar_lea.vmem %s3428_s1, %s2562_s9  ;;  %s3456_s9 = smov 108  }
 0x30a   : > { %v3159_v25 = vld [vmem:[%s250_s11] sm:$0xff]  ;;  %s3457_s12 = smov 112   ;;  %s3458_s11 = smov 100  }
 0x30d   : > { %1710 = vrot.lane.b32.xlu0 %v3127_v23, %s2848_s13  ;;  %1707 = vrot.lane.b32.xlu1 %v3127_v23, %s2849_s6 }
 0x311   : > { %1716 = vrot.lane.b32.xlu0 %v3127_v23, %s2850_s27  ;;  %1713 = vrot.lane.b32.xlu1 %v3127_v23, %s2851_s10 }
 0x315   : > { %1722 = vrot.lane.b32.xlu0 %v3127_v23, %s3451_s24  ;;  %1719 = vrot.lane.b32.xlu1 %v3127_v23, %s2853_s23  ;;  %s3459_s24 = smov 104  }
 0x319   : > { %1725 = vrot.lane.b32.xlu1 %v3127_v23, %s2854_s14  ;;  %1365 = vrot.lane.b32.xlu0 %v3159_v25, %s2822_s30  ;;  %s3460_s30 = smov 96  }
 0x31d   : > { %1371 = vrot.lane.b32.xlu0 %v3159_v25, %s2823_s5  ;;  %1368 = vrot.lane.b32.xlu1 %v3159_v25, %s3455_s8  ;;  %s3461_s5 = smov 72  }
 0x321   : > { %1377 = vrot.lane.b32.xlu0 %v3159_v25, %s3456_s9  ;;  %1374 = vrot.lane.b32.xlu1 %v3159_v25, %s3457_s12  ;;  %s3466_s9 = smov 24  }
 0x325   : > { %1383 = vrot.lane.b32.xlu0 %v3159_v25, %s3458_s11  ;;  %1380 = vrot.lane.b32.xlu1 %v3159_v25, %s3459_s24  ;;  %s3467_s11 = smov 48  }
 0x329   : > { %1389 = vrot.lane.b32.xlu0 %v3159_v25, %s2849_s6  ;;  %1386 = vrot.lane.b32.xlu1 %v3159_v25, %s3460_s30  ;;  %s3462_s6 = smov 4  }
 0x32d   : > { %1395 = vrot.lane.b32.xlu0 %v3159_v25, %s2851_s10  ;;  %1392 = vrot.lane.b32.xlu1 %v3159_v25, %s2848_s13  ;;  %s3463_s10 = smov 16  }
 0x331   : > { %1401 = vrot.lane.b32.xlu0 %v3159_v25, %s2853_s23  ;;  %1398 = vrot.lane.b32.xlu1 %v3159_v25, %s2850_s27  ;;  %s3464_s23 = smov 8  }
 0x335   : > { %1407 = vrot.lane.b32.xlu0 %v3159_v25, %s2854_s14  ;;  %1404 = vrot.lane.b32.xlu1 %v3159_v25, %s3461_s5  ;;  %s3465_s14 = smov 32  }
 0x36f   : > { %v1687_v26 = vpop.permute.xlu0 %1686  ;;  %v1684_v27 = vpop.permute.xlu1 %1683 }
 0x370   : > { %v1728_v33 = vcombine.low %v3127_v23, %v1687_v26  ;;  %v1729_v46 = vcombine.high %v3127_v23, %v1687_v26 }
 0x372   : > { %v1736_v38 = vrot.slane %v1728_v33, %v2983_v15  ;;  %v1743_v57 = vrot.slane %v1729_v46, %v2983_v15 }
 0x373   : > { %v1693_v28 = vpop.permute.xlu0 %1692  ;;  %v1690_v29 = vpop.permute.xlu1 %1689 }
 0x374   : > { %v1744_v30 = vcombine.low %v1684_v27, %v1690_v29  ;;  %v1745_v41 = vcombine.high %v1684_v27, %v1690_v29 }
 0x376   : > { %v1752_v34 = vrot.slane %v1744_v30, %v2983_v15  ;;  %v1759_v52 = vrot.slane %v1745_v41, %v2983_v15 }
 0x377   : > { %v1699_v31 = vpop.permute.xlu0 %1698  ;;  %v1696_v32 = vpop.permute.xlu1 %1695 }
 0x378   : > { %v1760_v35 = vcombine.low %v1693_v28, %v1699_v31  ;;  %v1792_v42 = vcombine.low %v1736_v38, %v1752_v34  ;;  %v1761_v43 = vcombine.high %v1693_v28, %v1699_v31  ;;  %v1793_v53 = vcombine.high %v1736_v38, %v1752_v34 }
 0x379   : > { %v1808_v12 = vcombine.low %v1743_v57, %v1759_v52  ;;  %v1809_v8 = vcombine.high %v1743_v57, %v1759_v52 }
 0x37a   : > { %v1768_v44 = vrot.slane %v1760_v35, %v2983_v15  ;;  %v1775_v54 = vrot.slane %v1761_v43, %v2983_v15  ;;  %v1800_v55 = vrot.slane %v1792_v42, %v2985_v22  ;;  %v1807_v1 = vrot.slane %v1793_v53, %v2985_v22 }
 0x37b   : > { %v3190_v36 = vpop.permute.xlu0 %1704  ;;  %v1702_v37 = vpop.permute.xlu1 %1701  ;;  %v1816_v13 = vrot.slane %v1808_v12, %v2985_v22  ;;  %v1823_v26 = vrot.slane %v1809_v8, %v2985_v22 }
 0x37c   : > { %v1776_v39 = vcombine.low %v1696_v32, %v1702_v37  ;;  %v1777_v40 = vcombine.high %v1696_v32, %v1702_v37 }
 0x37e   : > { %v1784_v45 = vrot.slane %v1776_v39, %v2983_v15  ;;  %v1791_v49 = vrot.slane %v1777_v40, %v2983_v15 }
 0x37f   : > { %v3196_v47 = vpop.permute.xlu0 %1710  ;;  %v1708_v48 = vpop.permute.xlu1 %1707 }
 0x380   : > { %v1824_v50 = vcombine.low %v1768_v44, %v1784_v45  ;;  %v1825_v51 = vcombine.high %v1768_v44, %v1784_v45  ;;  %v1840_v60 = vcombine.low %v1775_v54, %v1791_v49  ;;  %v1841_v3 = vcombine.high %v1775_v54, %v1791_v49 }
 0x381   : > { %v1864_v4 = vcombine.low %v3190_v36, %v3196_v47  ;;  %v1865_v30 = vcombine.high %v3190_v36, %v3196_v47 }
 0x382   : > { %v1832_v56 = vrot.slane %v1824_v50, %v2985_v22  ;;  %v1839_v0 = vrot.slane %v1825_v51, %v2985_v22  ;;  %v1848_v7 = vrot.slane %v1840_v60, %v2985_v22  ;;  %v1855_v17 = vrot.slane %v1841_v3, %v2985_v22 }
 0x383   : > { %v1717_v58 = vpop.permute.xlu0 %1716  ;;  %v1714_v59 = vpop.permute.xlu1 %1713  ;;  %v1872_v14 = vrot.slane %v1864_v4, %v2983_v15  ;;  %v1879_v36 = vrot.slane %v1865_v30, %v2983_v15 }
 0x384   : > { %v1857_v62 = vcombine.high %v1800_v55, %v1832_v56  ;;  %v1856_v63 = vcombine.low %v1800_v55, %v1832_v56  ;;  %v1880_v11 = vcombine.low %v1708_v48, %v1714_v59  ;;  %v1859_v5 = vcombine.high %v1807_v1, %v1839_v0 }
 0x385   : > { %v1858_v6 = vcombine.low %v1807_v1, %v1839_v0  ;;  %v1861_v20 = vcombine.high %v1816_v13, %v1848_v7  ;;  %v1860_v21 = vcombine.low %v1816_v13, %v1848_v7  ;;  %v1881_v23 = vcombine.high %v1708_v48, %v1714_v59 }
 0x386   : > { %2020 = vrot.lane.b32.xlu0 %v1857_v62, %s3462_s6  ;;  %2016 = vrot.lane.b32.xlu1 %v1856_v63, %s3462_s6  ;;  %v1888_v9 = vrot.slane %v1880_v11, %v2983_v15  ;;  %v1863_v31 = vcombine.high %v1823_v26, %v1855_v17  ;;  %v1862_v35 = vcombine.low %v1823_v26, %v1855_v17 }
 0x387   : > { %v1723_v61 = vpop.permute.xlu0 %1722  ;;  %v1720_v2 = vpop.permute.xlu1 %1719  ;;  %v1895_v37 = vrot.slane %v1881_v23, %v2983_v15 }
 0x388   : > { %v1896_v10 = vcombine.low %v1717_v58, %v1723_v61  ;;  %v1928_v24 = vcombine.low %v1872_v14, %v1888_v9  ;;  %v1897_v27 = vcombine.high %v1717_v58, %v1723_v61  ;;  %v1929_v38 = vcombine.high %v1872_v14, %v1888_v9 }
 0x389   : > { %v1944_v46 = vcombine.low %v1879_v36, %v1895_v37  ;;  %v1945_v52 = vcombine.high %v1879_v36, %v1895_v37 }
 0x38a   : > { %2028 = vrot.lane.b32.xlu0 %v1859_v5, %s3462_s6  ;;  %2024 = vrot.lane.b32.xlu1 %v1858_v6, %s3462_s6  ;;  %v1904_v28 = vrot.slane %v1896_v10, %v2983_v15  ;;  %v1911_v39 = vrot.slane %v1897_v27, %v2983_v15  ;;  %v1936_v40 = vrot.slane %v1928_v24, %v2985_v22 }
 0x38b   : > { %v1726_v16 = vpop.permute.xlu1 %1725  ;;  %v1943_v47 = vrot.slane %v1929_v38, %v2985_v22  ;;  %v1952_v53 = vrot.slane %v1944_v46, %v2985_v22  ;;  %v1959_v57 = vrot.slane %v1945_v52, %v2985_v22  ;;  %v1366_v60 = vpop.permute.xlu0 %1365 }
 0x38c   : > { %v1912_v18 = vcombine.low %v1720_v2, %v1726_v16  ;;  %v1913_v19 = vcombine.high %v1720_v2, %v1726_v16 }
 0x38e   : > { %v1920_v29 = vrot.slane %v1912_v18, %v2983_v15  ;;  %2036 = vrot.lane.b32.xlu0 %v1861_v20, %s3462_s6  ;;  %2032 = vrot.lane.b32.xlu1 %v1860_v21, %s3462_s6  ;;  %v1927_v32 = vrot.slane %v1913_v19, %v2983_v15 }
 0x38f   : > { %v1372_v62 = vpop.permute.xlu0 %1371  ;;  %v1369_v63 = vpop.permute.xlu1 %1368 }
 0x390   : > { %v1960_v33 = vcombine.low %v1904_v28, %v1920_v29  ;;  %v1961_v34 = vcombine.high %v1904_v28, %v1920_v29  ;;  %v1976_v42 = vcombine.low %v1911_v39, %v1927_v32  ;;  %v1977_v48 = vcombine.high %v1911_v39, %v1927_v32 }
 0x391   : > { %v1426_v5 = vcombine.low %v1366_v60, %v1372_v62  ;;  %v1410_v6 = vcombine.low %v3159_v25, %v1369_v63  ;;  %v1427_v18 = vcombine.high %v1366_v60, %v1372_v62  ;;  %v1411_v19 = vcombine.high %v3159_v25, %v1369_v63 }
 0x392   : > { %2044 = vrot.lane.b32.xlu0 %v1863_v31, %s3462_s6  ;;  %2040 = vrot.lane.b32.xlu1 %v1862_v35, %s3462_s6  ;;  %v1968_v41 = vrot.slane %v1960_v33, %v2985_v22  ;;  %v1975_v45 = vrot.slane %v1961_v34, %v2985_v22  ;;  %v1984_v51 = vrot.slane %v1976_v42, %v2985_v22 }
 0x393   : > { %v1991_v56 = vrot.slane %v1977_v48, %v2985_v22  ;;  %v1378_v0 = vpop.permute.xlu0 %1377  ;;  %v1375_v11 = vpop.permute.xlu1 %1374  ;;  %v1434_v13 = vrot.slane %v1426_v5, %v2983_v15  ;;  %v1418_v14 = vrot.slane %v1410_v6, %v2983_v15  ;;  %v1441_v26 = vrot.slane %v1427_v18, %v2983_v15 }
 0x394   : > { %v1993_v43 = vcombine.high %v1936_v40, %v1968_v41  ;;  %v1992_v44 = vcombine.low %v1936_v40, %v1968_v41  ;;  %v1995_v49 = vcombine.high %v1943_v47, %v1975_v45  ;;  %v1994_v50 = vcombine.low %v1943_v47, %v1975_v45 }
 0x395   : > { %v1997_v54 = vcombine.high %v1952_v53, %v1984_v51  ;;  %v1996_v55 = vcombine.low %v1952_v53, %v1984_v51  ;;  %v1999_v58 = vcombine.high %v1959_v57, %v1991_v56  ;;  %v1998_v59 = vcombine.low %v1959_v57, %v1991_v56 }
 0x396   : > { %2022 = vrot.lane.b32.xlu0 %v1993_v43, %s3462_s6  ;;  %2018 = vrot.lane.b32.xlu1 %v1992_v44, %s3462_s6  ;;  %v1475_v23 = vcombine.high %v1418_v14, %v1434_v13  ;;  %v1425_v27 = vrot.slane %v1411_v19, %v2983_v15  ;;  %v1474_v32 = vcombine.low %v1418_v14, %v1434_v13 }
 0x397   : > { %v1384_v12 = vpop.permute.xlu0 %1383  ;;  %v1381_v1 = vpop.permute.xlu1 %1380 }
 0x398   : > { %v1458_v7 = vcombine.low %v1378_v0, %v1384_v12  ;;  %v1442_v8 = vcombine.low %v1375_v11, %v1381_v1  ;;  %v1459_v20 = vcombine.high %v1378_v0, %v1384_v12  ;;  %v1443_v21 = vcombine.high %v1375_v11, %v1381_v1 }
 0x399   : > { %v1489_v25 = vrot.slane %v1475_v23, %v2985_v22  ;;  %v1490_v38 = vcombine.low %v1425_v27, %v1441_v26  ;;  %v1491_v39 = vcombine.high %v1425_v27, %v1441_v26  ;;  %v1482_v43 = vrot.slane %v1474_v32, %v2985_v22 }
 0x39a   : > { %2030 = vrot.lane.b32.xlu0 %v1995_v49, %s3462_s6  ;;  %2026 = vrot.lane.b32.xlu1 %v1994_v50, %s3462_s6  ;;  %v1466_v16 = vrot.slane %v1458_v7, %v2983_v15  ;;  %v1450_v17 = vrot.slane %v1442_v8, %v2983_v15  ;;  %v1473_v28 = vrot.slane %v1459_v20, %v2983_v15 }
 0x39b   : > { %v1390_v3 = vpop.permute.xlu0 %1389  ;;  %v1387_v4 = vpop.permute.xlu1 %1386  ;;  %v1457_v29 = vrot.slane %v1443_v21, %v2983_v15  ;;  %v1498_v53 = vrot.slane %v1490_v38, %v2985_v22 }
 0x39c   : > { %v1507_v24 = vcombine.high %v1450_v17, %v1466_v16  ;;  %v1506_v33 = vcombine.low %v1450_v17, %v1466_v16 }
 0x39d   : > { %v1522_v40 = vcombine.low %v1457_v29, %v1473_v28  ;;  %v1523_v41 = vcombine.high %v1457_v29, %v1473_v28 }
 0x39e   : > { %2038 = vrot.lane.b32.xlu0 %v1997_v54, %s3462_s6  ;;  %2034 = vrot.lane.b32.xlu1 %v1996_v55, %s3462_s6  ;;  %v1521_v37 = vrot.slane %v1507_v24, %v2985_v22  ;;  %v1514_v44 = vrot.slane %v1506_v33, %v2985_v22  ;;  %v1505_v54 = vrot.slane %v1491_v39, %v2985_v22 }
 0x39f   : > { %v1396_v61 = vpop.permute.xlu0 %1395  ;;  %v1393_v2 = vpop.permute.xlu1 %1392  ;;  %v1530_v55 = vrot.slane %v1522_v40, %v2985_v22  ;;  %v1537_v56 = vrot.slane %v1523_v41, %v2985_v22 }
 0x3a0   : > { %v1562_v34 = vcombine.low %v1390_v3, %v1396_v61  ;;  %v1546_v35 = vcombine.low %v1387_v4, %v1393_v2  ;;  %v1563_v45 = vcombine.high %v1390_v3, %v1396_v61  ;;  %v1547_v47 = vcombine.high %v1387_v4, %v1393_v2 }
 0x3a1   : > { %v1541_v51 = vcombine.high %v1489_v25, %v1521_v37  ;;  %v1540_v52 = vcombine.low %v1489_v25, %v1521_v37  ;;  %v1538_v60 = vcombine.low %v1482_v43, %v1514_v44  ;;  %v1543_v16 = vcombine.high %v1498_v53, %v1530_v55 }
 0x3a2   : > { %2046 = vrot.lane.b32.xlu0 %v1999_v58, %s3462_s6  ;;  %2042 = vrot.lane.b32.xlu1 %v1998_v59, %s3462_s6  ;;  %v1570_v46 = vrot.slane %v1562_v34, %v2983_v15  ;;  %v1554_v48 = vrot.slane %v1546_v35, %v2983_v15  ;;  %v1539_v59 = vcombine.high %v1482_v43, %v1514_v44  ;;  %s3468_s6 = smov 40  }
 0x3a3   : > { %v3247_v9 = vpop.permute.xlu0 %1401  ;;  %v3249_v10 = vpop.permute.xlu1 %1398  ;;  %v1577_v0 = vrot.slane %v1563_v45, %v2983_v15  ;;  %v1561_v11 = vrot.slane %v1547_v47, %v2983_v15  ;;  %v1542_v17 = vcombine.low %v1498_v53, %v1530_v55  ;;  %v1545_v18 = vcombine.high %v1505_v54, %v1537_v56 }
 0x3a4   : > { %v1610_v12 = vcombine.low %v1554_v48, %v1570_v46  ;;  %v1611_v1 = vcombine.high %v1554_v48, %v1570_v46  ;;  %v1544_v19 = vcombine.low %v1505_v54, %v1537_v56 }
 0x3a5   : > { %v1626_v23 = vcombine.low %v1561_v11, %v1577_v0  ;;  %v1627_v24 = vcombine.high %v1561_v11, %v1577_v0 }
 0x3a6   : > { %v1618_v20 = vrot.slane %v1610_v12, %v2985_v22  ;;  %v1625_v21 = vrot.slane %v1611_v1, %v2985_v22 }
 0x3a7   : > { %v1408_v30 = vpop.permute.xlu0 %1407  ;;  %v1405_v31 = vpop.permute.xlu1 %1404 }
 0x3a8   : > { %v1594_v49 = vcombine.low %v3247_v9, %v1408_v30  ;;  %v1578_v50 = vcombine.low %v3249_v10, %v1405_v31  ;;  %v1595_v5 = vcombine.high %v3247_v9, %v1408_v30  ;;  %v1579_v6 = vcombine.high %v3249_v10, %v1405_v31 }
 0x3aa   : > { %v1602_v3 = vrot.slane %v1594_v49, %v2983_v15  ;;  %v1586_v4 = vrot.slane %v1578_v50, %v2983_v15  ;;  %v1609_v10 = vrot.slane %v1595_v5, %v2983_v15  ;;  %v1593_v29 = vrot.slane %v1579_v6, %v2983_v15 }
 0x3ac   : > { %v1642_v26 = vcombine.low %v1586_v4, %v1602_v3  ;;  %v1643_v27 = vcombine.high %v1586_v4, %v1602_v3  ;;  %v1658_v55 = vcombine.low %v1593_v29, %v1609_v10  ;;  %v1659_v56 = vcombine.high %v1593_v29, %v1609_v10 }
 0x3f8   : > { %v2021_v36 = vpop.permute.xlu0 %2020  ;;  %v2017_v42 = vpop.permute.xlu1 %2016 }
 0x3f9   : > { %v2066_v61 = vsel %vm1260_vm2, %v1539_v59, %v2021_v36  ;;  %v2064_v2 = vsel %vm1260_vm2, %v1538_v60, %v2017_v42  ;;  %v1650_v36 = vrot.slane %v1642_v26, %v2985_v22  ;;  %v1657_v42 = vrot.slane %v1643_v27, %v2985_v22 }
 0x3fb   : > { %v1675_v60 = vcombine.high %v1618_v20, %v1650_v36  ;;  %v1674_v11 = vcombine.low %v1618_v20, %v1650_v36 }
 0x3fc   : > { %v2029_v57 = vpop.permute.xlu0 %2028  ;;  %v2025_v58 = vpop.permute.xlu1 %2024 }
 0x3fd   : > { %v2070_v62 = vsel %vm1260_vm2, %v1541_v51, %v2029_v57  ;;  %v2068_v63 = vsel %vm1260_vm2, %v1540_v52, %v2025_v58  ;;  %v1634_v51 = vrot.slane %v1626_v23, %v2985_v22  ;;  %v1641_v52 = vrot.slane %v1627_v24, %v2985_v22 }
 0x3fe   : > { %v2096_v7 = vcombine.low %v2066_v61, %v2070_v62  ;;  %v2080_v8 = vcombine.low %v2064_v2, %v2068_v63  ;;  %v2097_v28 = vcombine.high %v2066_v61, %v2070_v62  ;;  %v2081_v9 = vcombine.high %v2064_v2, %v2068_v63 }
 0x3ff   : > { %v1677_v62 = vcombine.high %v1625_v21, %v1657_v42  ;;  %v1676_v63 = vcombine.low %v1625_v21, %v1657_v42 }
 0x400   : > { %v2037_v13 = vpop.permute.xlu0 %2036  ;;  %v2033_v14 = vpop.permute.xlu1 %2032  ;;  %v2104_v30 = vrot.slane %v2096_v7, %v2983_v15  ;;  %v2088_v31 = vrot.slane %v2080_v8, %v2983_v15  ;;  %v2111_v43 = vrot.slane %v2097_v28, %v2983_v15  ;;  %v2095_v44 = vrot.slane %v2081_v9, %v2983_v15 }
 0x401   : > { %v2074_v34 = vsel %vm1260_vm2, %v1543_v16, %v2037_v13  ;;  %v2072_v35 = vsel %vm1260_vm2, %v1542_v17, %v2033_v14  ;;  %v1666_v7 = vrot.slane %v1658_v55, %v2985_v22  ;;  %v1673_v8 = vrot.slane %v1659_v56, %v2985_v22 }
 0x402   : > { %v2144_v53 = vcombine.low %v2088_v31, %v2104_v30  ;;  %v2145_v54 = vcombine.high %v2088_v31, %v2104_v30  ;;  %v2160_v0 = vcombine.low %v2095_v44, %v2111_v43  ;;  %v2161_v20 = vcombine.high %v2095_v44, %v2111_v43 }
 0x403   : > { %v1679_v28 = vcombine.high %v1634_v51, %v1666_v7  ;;  %v1678_v9 = vcombine.low %v1634_v51, %v1666_v7  ;;  %v1681_v10 = vcombine.high %v1641_v52, %v1673_v8  ;;  %v1680_v29 = vcombine.low %v1641_v52, %v1673_v8 }
 0x404   : > { %v2045_v32 = vpop.permute.xlu0 %2044  ;;  %v2041_v33 = vpop.permute.xlu1 %2040  ;;  %v2159_v5 = vrot.slane %v2145_v54, %v2985_v22  ;;  %v3310_v6 = vrot.slane %v2144_v53, %v2985_v22  ;;  %v2168_v27 = vrot.slane %v2160_v0, %v2985_v22 }
 0x405   : > { %v2078_v25 = vsel %vm1260_vm2, %v1545_v18, %v2045_v32  ;;  %v2076_v37 = vsel %vm1260_vm2, %v1544_v19, %v2041_v33 }
 0x406   : > { %v2128_v38 = vcombine.low %v2074_v34, %v2078_v25  ;;  %v2129_v39 = vcombine.high %v2074_v34, %v2078_v25  ;;  %v2112_v40 = vcombine.low %v2072_v35, %v2076_v37  ;;  %v2113_v41 = vcombine.high %v2072_v35, %v2076_v37 }
 0x408   : > { %v2136_v45 = vrot.slane %v2128_v38, %v2983_v15  ;;  %v2143_v46 = vrot.slane %v2129_v39, %v2983_v15  ;;  %v2120_v47 = vrot.slane %v2112_v40, %v2983_v15  ;;  %v2127_v48 = vrot.slane %v2113_v41, %v2983_v15  ;;  %v2023_v49 = vpop.permute.xlu0 %2022  ;;  %v2019_v50 = vpop.permute.xlu1 %2018 }
 0x409   : > { %v2067_v13 = vsel %vm1260_vm2, %v1675_v60, %v2023_v49  ;;  %v2065_v14 = vsel %vm1260_vm2, %v1674_v11, %v2019_v50  ;;  %v2175_v39 = vrot.slane %v2161_v20, %v2985_v22 }
 0x40a   : > { %v2176_v57 = vcombine.low %v2120_v47, %v2136_v45  ;;  %v2177_v58 = vcombine.high %v2120_v47, %v2136_v45  ;;  %v2192_v59 = vcombine.low %v2127_v48, %v2143_v46  ;;  %v2193_v16 = vcombine.high %v2127_v48, %v2143_v46 }
 0x40c   : > { %v2031_v12 = vpop.permute.xlu0 %2030  ;;  %v2027_v1 = vpop.permute.xlu1 %2026  ;;  %v2191_v3 = vrot.slane %v2177_v58, %v2985_v22  ;;  %v3304_v4 = vrot.slane %v2176_v57, %v2985_v22  ;;  %v2200_v19 = vrot.slane %v2192_v59, %v2985_v22  ;;  %v2207_v32 = vrot.slane %v2193_v16, %v2985_v22 }
 0x40d   : > { %v2071_v61 = vsel %vm1260_vm2, %v1677_v62, %v2031_v12  ;;  %v2069_v2 = vsel %vm1260_vm2, %v1676_v63, %v2027_v1 }
 0x40e   : > { %v2210_v17 = vcombine.low %v2159_v5, %v2191_v3  ;;  %v2209_v18 = vcombine.high %v3310_v6, %v3304_v4  ;;  %v2232_v21 = vcombine.low %v2067_v13, %v2071_v61  ;;  %v2216_v23 = vcombine.low %v2065_v14, %v2069_v2 }
 0x40f   : > { %v2212_v30 = vcombine.low %v2168_v27, %v2200_v19  ;;  %v2211_v31 = vcombine.high %v2159_v5, %v2191_v3  ;;  %v2208_v33 = vcombine.low %v3310_v6, %v3304_v4  ;;  %v2233_v46 = vcombine.high %v2067_v13, %v2071_v61 }
 0x410   : > { %v2039_v24 = vpop.permute.xlu0 %2038  ;;  %v2035_v26 = vpop.permute.xlu1 %2034  ;;  %2357 = vrot.lane.b32.xlu0 %v2210_v17, %s3463_s10  ;;  %2353 = vrot.lane.b32.xlu1 %v2209_v18, %s3464_s23  ;;  %v2240_v34 = vrot.slane %v2232_v21, %v2983_v15  ;;  %v2224_v35 = vrot.slane %v2216_v23, %v2983_v15  ;;  %v2214_v47 = vcombine.low %v2175_v39, %v2207_v32  ;;  %s3469_s10 = smov 56   ;;  %s2855_s23 = smov 64  }
 0x411   : > { %v2075_v25 = vsel %vm1260_vm2, %v1679_v28, %v2039_v24  ;;  %v2073_v40 = vsel %vm1260_vm2, %v1678_v9, %v2035_v26  ;;  %v2213_v48 = vcombine.high %v2168_v27, %v2200_v19  ;;  %v2217_v49 = vcombine.high %v2065_v14, %v2069_v2 }
 0x412   : > { %v2280_v50 = vcombine.low %v2224_v35, %v2240_v34  ;;  %v2247_v57 = vrot.slane %v2233_v46, %v2983_v15  ;;  %v2215_v58 = vcombine.high %v2175_v39, %v2207_v32  ;;  %v2281_v60 = vcombine.high %v2224_v35, %v2240_v34 }
 0x413   : > { %v2231_v59 = vrot.slane %v2217_v49, %v2983_v15 }
 0x414   : > { %v2047_v37 = vpop.permute.xlu0 %2046  ;;  %v2043_v38 = vpop.permute.xlu1 %2042  ;;  %2365 = vrot.lane.b32.xlu0 %v2212_v30, %s3465_s14  ;;  %2361 = vrot.lane.b32.xlu1 %v2211_v31, %s3466_s9  ;;  %v2288_v62 = vrot.slane %v2280_v50, %v2985_v22  ;;  %v2295_v61 = vrot.slane %v2281_v60, %v2985_v22 }
 0x415   : > { %v2079_v41 = vsel %vm1260_vm2, %v1681_v10, %v2047_v37  ;;  %v2077_v36 = vsel %vm1260_vm2, %v1680_v29, %v2043_v38  ;;  %v2296_v3 = vcombine.low %v2231_v59, %v2247_v57  ;;  %v2297_v8 = vcombine.high %v2231_v59, %v2247_v57 }
 0x416   : > { %v2264_v42 = vcombine.low %v2075_v25, %v2079_v41  ;;  %v2265_v43 = vcombine.high %v2075_v25, %v2079_v41  ;;  %v2248_v44 = vcombine.low %v2073_v40, %v2077_v36  ;;  %v2249_v45 = vcombine.high %v2073_v40, %v2077_v36 }
 0x417   : > { %v2304_v13 = vrot.slane %v2296_v3, %v2985_v22  ;;  %v2311_v18 = vrot.slane %v2297_v8, %v2985_v22  ;;  %vm2423_vm2 = vcmask 654336  }
 0x418   : > { %v2272_v51 = vrot.slane %v2264_v42, %v2983_v15  ;;  %v2256_v52 = vrot.slane %v2248_v44, %v2983_v15  ;;  %2373 = vrot.lane.b32.xlu0 %v2214_v47, %s3467_s11  ;;  %2369 = vrot.lane.b32.xlu1 %v2213_v48, %s3468_s6  ;;  %v2279_v53 = vrot.slane %v2265_v43, %v2983_v15  ;;  %s2856_s6 = smov [#allocation2]  }
 0x419   : > { %v2263_v54 = vrot.slane %v2249_v45, %v2983_v15 }
 0x41a   : > { %v2312_v55 = vcombine.low %v2256_v52, %v2272_v51  ;;  %v2313_v56 = vcombine.high %v2256_v52, %v2272_v51 }
 0x41b   : > { %v2328_v0 = vcombine.low %v2263_v54, %v2279_v53  ;;  %v2329_v15 = vcombine.high %v2263_v54, %v2279_v53 }
 0x41c   : > { %v2320_v63 = vrot.slane %v2312_v55, %v2985_v22  ;;  %2377 = vrot.lane.b32.xlu1 %v2215_v58, %s3469_s10  ;;  %v2327_v1 = vrot.slane %v2313_v56, %v2985_v22  ;;  %s2729_s10 = sshll.u32 %s2856_s6, 4  ;;  %s2730_s10 = int_to_ptr.vmem [resolvable:$false] %s2729_s10 }
 0x41d   : > { %v2336_v5 = vrot.slane %v2328_v0, %v2985_v22  ;;  %v2343_v16 = vrot.slane %v2329_v15, %v2985_v22 }
 0x41e   : > { %v2345_v11 = vcombine.high %v2288_v62, %v2320_v63  ;;  %v2344_v12 = vcombine.low %v2288_v62, %v2320_v63  ;;  %v2346_v2 = vcombine.low %v2295_v61, %v2327_v1  ;;  %v2347_v7 = vcombine.high %v2295_v61, %v2327_v1 }
 0x41f   : > { %v2348_v14 = vcombine.low %v2304_v13, %v2336_v5  ;;  %v2349_v17 = vcombine.high %v2304_v13, %v2336_v5  ;;  %v2350_v19 = vcombine.low %v2311_v18, %v2343_v16  ;;  %v2351_v20 = vcombine.high %v2311_v18, %v2343_v16 }
 0x420   : > { %2381 = vrot.lane.b32.xlu0 %v2344_v12, %s2855_s23  ;;  %2385 = vrot.lane.b32.xlu1 %v2345_v11, %s3461_s5  ;;  %s2731_s23 = scalar_lea.vmem %s2730_s10, 256 }
 0x424   : > { %2389 = vrot.lane.b32.xlu0 %v2346_v2, %s2850_s27  ;;  %2393 = vrot.lane.b32.xlu1 %v2347_v7, %s2848_s13  ;;  %s236_s27 = sand.u32 1, %s2795_s16  }
 0x425   : > { %s2559_s13 = sshll.u32 %s236_s27, 3 }
 0x428   : > { %2397 = vrot.lane.b32.xlu0 %v2348_v14, %s3460_s30  ;;  %2401 = vrot.lane.b32.xlu1 %v2349_v17, %s3459_s24  ;;  %s2600_s24 = sshll.u32 %s2807_s19, 1  ;;  %s238_s30 = scalar_lea.vmem [#allocation2], %s2559_s13 }
 0x429   : > { %s2452_s5 = sshll.u32 %s238_s30, 4  ;;  %s3376_s5 = int_to_ptr.vmem [resolvable:$true] %s2452_s5 }
 0x42a   : > { %s2725_s11 = scalar_lea.vmem %s3376_s5, 128  ;;  %p2732_p4 = scmp.lt.s32.totalorder %s3376_s5, %s2730_s10 }
 0x42b   : > { %p2726_p0 = scmp.ne.s32.totalorder %s3376_s5, %s2725_s11  ;;  %p2733_p5 = scmp.lt.s32.totalorder %s2731_s23, %s2725_s11 }
 0x42c   : > { %2405 = vrot.lane.b32.xlu0 %v2350_v19, %s3457_s12  ;;  %2409 = vrot.lane.b32.xlu1 %v2351_v20, %s3455_s8  ;;  %s2448_s8 = sadd.s32 %s2803_s18, %s2600_s24  ;;  %s2437_s18 = scalar_lea.sflag [#allocation3], %s236_s27 }
 0x42d   : > { %s2601_s12 = sshll.u32 %s2448_s8, 7  ;;  %p2727_p1 = pnand %p2726_p0, %p2933_p3 }
 0x42e   : > { %s3374_s9 = scalar_lea.hbm %s3431_s4, %s2601_s12  ;;  %p2734_p6 = por %p2733_p5, %p2732_p4 }
 0x42f   : > { %p2728_p2 = pneg %p2727_p1 }
 0x431   : > { %p2735_p7 = pnand %p2734_p6, %p2728_p2 }
 0x482   : > { %v2358_v21 = vpop.permute.xlu0 %2357  ;;  %v2354_v23 = vpop.permute.xlu1 %2353 }
 0x483   : > { %v2412_v24 = vsel %vm258_vm0, %v2208_v33, %v2354_v23  ;;  %vm2421_vm0 = vcmask 588800  }
 0x484   : > { %v2413_v22 = vsel %vm1265_vm4, %v2412_v24, %v2358_v21  ;;  %vm2427_vm4 = vcmask 785408  }
 0x486   : > { %v2362_v26 = vpop.permute.xlu1 %2361  ;;  %v2366_v27 = vpop.permute.xlu0 %2365 }
 0x487   : > { %v2414_v28 = vsel %vm1269_vm6, %v2413_v22, %v2362_v26  ;;  %vm2431_vm6 = vcmask 916480  }
 0x488   : > { %v2415_v10 = vsel %vm1273_vm8, %v2414_v28, %v2366_v27 }
 0x48a   : > { %v2370_v9 = vpop.permute.xlu1 %2369  ;;  %v2374_v29 = vpop.permute.xlu0 %2373 }
 0x48b   : > { %v2416_v30 = vsel %vm1277_vm10, %v2415_v10, %v2370_v9 }
 0x48c   : > { %v2417_v4 = vsel %vm1281_vm12, %v2416_v30, %v2374_v29 }
 0x48e   : > { %v2378_v31 = vpop.permute.xlu1 %2377 }
 0x48f   : > { %v2418_v6 = vsel %vm1285_vm14, %v2417_v4, %v2378_v31 }
 0x492   : > { %v2382_v32 = vpop.permute.xlu0 %2381  ;;  %v2386_v34 = vpop.permute.xlu1 %2385 }
 0x493   : > { %v2420_v33 = vsel %vm2419_vm1, %v2418_v6, %v2382_v32 }
 0x494   : > { %v2422_v35 = vsel %vm2421_vm0, %v2420_v33, %v2386_v34 }
 0x496   : > { %v2390_v25 = vpop.permute.xlu0 %2389  ;;  %v2394_v38 = vpop.permute.xlu1 %2393 }
 0x497   : > { %v2424_v37 = vsel %vm2423_vm2, %v2422_v35, %v2390_v25 }
 0x498   : > { %v2426_v39 = vsel %vm2425_vm3, %v2424_v37, %v2394_v38 }
 0x49a   : > { %v2398_v40 = vpop.permute.xlu0 %2397  ;;  %v2402_v36 = vpop.permute.xlu1 %2401 }
 0x49b   : > { %v2428_v41 = vsel %vm2427_vm4, %v2426_v39, %v2398_v40 }
 0x49c   : > { %v2430_v42 = vsel %vm2429_vm5, %v2428_v41, %v2402_v36 }
 0x49e   : > { %v2406_v43 = vpop.permute.xlu0 %2405  ;;  %v2410_v45 = vpop.permute.xlu1 %2409 }
 0x49f   : > { %v2432_v44 = vsel %vm2431_vm6, %v2430_v42, %v2406_v43 }
 0x4a0   : > { %v2434_v46 = vsel %vm2433_vm7, %v2432_v44, %v2410_v45 }
 0x4a1   : > { %2435 = vst [vmem:[%s238_s30] sm:$0xff] %v2434_v46 }
 0x4a2   : > { %2738 = shalt.err (!%p2735_p7)
}
 0x4a3   : > { %s2739_s27 = scalar_lea.hbm %s3374_s9, 128  ;;  %s2743_s8 = scalar_lea.hbm %s3431_s4, 512 }
 0x4a4   : > { %p2740_p9 = scmp.ne.s32.totalorder %s3374_s9, %s2739_s27  ;;  %p2744_p12 = scmp.lt.u32.totalorder %s3374_s9, %s3431_s4 }
 0x4a5   : > { %p2745_p13 = scmp.lt.u32.totalorder %s2743_s8, %s2739_s27  ;;  %p2747_p1 = scmp.lt.u32.totalorder %s2739_s27, %s3374_s9 }
 0x4a6   : > { %p2741_p10 = pnand %p2740_p9, %p2933_p3 }
 0x4a7   : > { %p2746_p0 = por %p2745_p13, %p2744_p12 }
 0x4a8   : > { %p2742_p11 = pneg %p2741_p10 }
 0x4a9   : > { %p2748_p2 = por %p2747_p1, %p2746_p0 }
 0x4ab   : > { %p2749_p4 = pnand %p2748_p2, %p2742_p11 }
 0x4ad   : > { %2752 = shalt.err (!%p2749_p4)
}
 0x4ae   : > { %2619 = dma.vmem_to_hbm [thread:$0]  (%p2933_p3), %s3376_s5, 128, %s3374_s9, %s2437_s18  }
 0x4af PF: > { %p2625_p5 = scmp.ge.s32.totalorder %s2819_s22, 2  ;;  %s2464_s19 = sand.u32 1, %s2791_s15  }
 0x4b0   : > { %s2465_s14 = scalar_lea.sflag [#allocation3], %s2464_s19 }
 0x4b1   : > { %p2622_p6 = pnand %p2625_p5, %p2942_p8 }
 0x4b3   : > { %2786 = dma.done.wait (!%p2622_p6), %s2465_s14, 128  }
 0x4b4   : > { %2788 = vsyncadd (!%p2622_p6), %s2465_s14, 4294967168  ;;  %s17_s22 = sadd.s32 1, %s2819_s22   ;;  %s3470_s15 = smov %s2795_s16 }
 0x4b5   : > { %p14_p7 = scmp.ge.s32.totalorder %s17_s22, 6   ;;  %s3471_s16 = smov %s2799_s17 }
 0x4b6   : > { %s3472_s17 = smov %s2951_s7  ;;  %s3473_s18 = smov %s2811_s20 }
 0x4b7   : > { %s3474_s19 = smov %s2815_s21  ;;  %s3475_s20 = smov %s3478_s25 }
 0x4b8   : > { %s3476_s21 = smov %s3482_s26  ;;  %16 = sbr.rel (!%p14_p7) target bundleno = 5 (0x5), region = 77 }
 0x4bf   :  { %2470 = vsyncpa [#allocation3], 1 }
 0x4c0   :  { %2472 = vsyncpa [#allocation3 + $0x1], 1 }

</bundles_post_ra>
